<compile_context>
chip_gen: v7x
topology: tpu7x:2x2x1
jax: 0.10.0
libtpu: 0.0.40
codegen_flags: <defaults>
</compile_context>

<pallas_src>
import functools

import jax
import jax.numpy as jnp
from jax.experimental import pallas as pl
from jax.experimental.pallas import tpu as pltpu


# ----------------------------------------------------------------------------- utils
def _round_up(x, m):
    return (x + m - 1) // m * m


def _pad2d(x, rows, cols):
    return jnp.pad(x, ((0, rows - x.shape[0]), (0, cols - x.shape[1])))


def _vmem_budget_bytes():
    """Generation-aware VMEM budget (leave ~25% headroom for the compiler)."""
    try:
        cap = int(pltpu.get_tpu_info().vmem_capacity_bytes)
    except Exception:
        cap = 64 << 20  # conservative fallback (v7x-class physical VMEM)
    return (cap * 3) // 4


def _full_spec(shape):
    # whole-array block (grid=() fused path)
    return pl.BlockSpec(shape, lambda *_: (0,) * len(shape))


# ------------------------------------------------------------------ fused small-graph
def _fused_kernel(a_ref, x_ref, *rest, n_layers):
    """All SAGEConv layers in one kernel; intermediate H never leaves VMEM."""
    o_ref = rest[-1]
    prm = rest[:-1]
    a = a_ref[...]
    h = x_ref[...].astype(jnp.float32)
    for l in range(n_layers):
        ws = prm[3 * l][...]
        wn = prm[3 * l + 1][...]
        b = prm[3 * l + 2][...]          # (1, F_out) f32, broadcasts over nodes
        cdt = ws.dtype
        hc = h.astype(cdt)
        # Reassociated neighbor path: A @ (H @ W_neigh)  (contract N^2 against F_out)
        hn = jnp.dot(hc, wn, preferred_element_type=jnp.float32).astype(cdt)
        out = (jnp.dot(hc, ws, preferred_element_type=jnp.float32)
               + jnp.dot(a, hn, preferred_element_type=jnp.float32)
               + b)
        if l != n_layers - 1:
            out = jnp.maximum(out, 0.0)
        h = out
    o_ref[...] = h.astype(o_ref.dtype)


def _fused_forward(a_p, x_p, pparams, *, vmem_limit):
    n_pad = a_p.shape[0]
    f_out_pad = pparams[-1][0].shape[1]
    flat = []
    in_specs = [_full_spec(a_p.shape), _full_spec(x_p.shape)]
    for ws, wn, b in pparams:
        flat += [ws, wn, b]
        in_specs += [_full_spec(ws.shape), _full_spec(wn.shape), _full_spec(b.shape)]
    kernel = functools.partial(_fused_kernel, n_layers=len(pparams))
    return pl.pallas_call(
        kernel,
        out_shape=jax.ShapeDtypeStruct((n_pad, f_out_pad), a_p.dtype),
        grid=(),
        in_specs=in_specs,
        out_specs=_full_spec((n_pad, f_out_pad)),
        compiler_params=pltpu.CompilerParams(vmem_limit_bytes=vmem_limit),
    )(a_p, x_p, *flat)


# ----------------------------------------------------------------- tiled per-layer
def _sage_tiled_kernel(a_ref, hk_ref, hi_ref, ws_ref, wn_ref, b_ref,
                       o_ref, acc_ref, *, apply_relu):
    """Row-tiled SAGEConv layer: accumulate A_tile @ H_tile over the neighbor axis,
    finalize with the two (small) weight matmuls + bias (+ ReLU) on the last k step."""
    k = pl.program_id(1)

    @pl.when(k == 0)
    def _():
        acc_ref[...] = jnp.zeros_like(acc_ref)

    acc_ref[...] += jnp.dot(a_ref[...], hk_ref[...],
                            preferred_element_type=jnp.float32)

    @pl.when(k == pl.num_programs(1) - 1)
    def _():
        out = (jnp.dot(acc_ref[...], wn_ref[...].astype(jnp.float32),
                       preferred_element_type=jnp.float32)
               + jnp.dot(hi_ref[...], ws_ref[...],
                         preferred_element_type=jnp.float32)
               + b_ref[...])
        if apply_relu:
            out = jnp.maximum(out, 0.0)
        o_ref[...] = out.astype(o_ref.dtype)


def sage_conv_tiled(a_pad, h_pad, w_self, w_neigh, bias2d, *,
                    apply_relu, tile_m, tile_k, vmem_limit):
    n_pad = a_pad.shape[0]
    f_in = h_pad.shape[1]
    f_out = w_self.shape[1]
    grid = (n_pad // tile_m, n_pad // tile_k)
    kernel = functools.partial(_sage_tiled_kernel, apply_relu=apply_relu)
    return pl.pallas_call(
        kernel,
        out_shape=jax.ShapeDtypeStruct((n_pad, f_out), h_pad.dtype),
        grid=grid,
        in_specs=[
            pl.BlockSpec((tile_m, tile_k), lambda i, k: (i, k)),   # A tile
            pl.BlockSpec((tile_k, f_in), lambda i, k: (k, 0)),     # H rows (aggregation)
            pl.BlockSpec((tile_m, f_in), lambda i, k: (i, 0)),     # H rows (self term)
            pl.BlockSpec((f_in, f_out), lambda i, k: (0, 0)),      # W_self (VMEM-resident)
            pl.BlockSpec((f_in, f_out), lambda i, k: (0, 0)),      # W_neigh (VMEM-resident)
            pl.BlockSpec((1, f_out), lambda i, k: (0, 0)),         # bias (VMEM-resident)
        ],
        out_specs=pl.BlockSpec((tile_m, f_out), lambda i, k: (i, 0)),
        scratch_shapes=[pltpu.VMEM((tile_m, f_in), jnp.float32)],  # f32 accumulator
        compiler_params=pltpu.CompilerParams(
            dimension_semantics=("parallel", "arbitrary"),
            vmem_limit_bytes=vmem_limit),
    )(a_pad, h_pad, h_pad, w_self, w_neigh, bias2d)


# ------------------------------------------------------------------------- forward
def _pad_params(params, compute_dtype):
    padded = []
    for ws, wn, b in params:
        fi, fo = ws.shape
        fip, fop = _round_up(fi, 128), _round_up(fo, 128)
        padded.append((
            _pad2d(ws, fip, fop).astype(compute_dtype),
            _pad2d(wn, fip, fop).astype(compute_dtype),
            jnp.pad(b, (0, fop - fo)).reshape(1, fop).astype(jnp.float32),
        ))
    return padded


def graphsage_forward(a_norm, inputs, params, *,
                      compute_dtype=jnp.float32, use_fused=None):
    """GraphSAGE.forward: dropout(identity in eval) -> [SAGEConv -> relu -> dropout]* -> SAGEConv."""
    # TODO(synk): nn.Dropout training-mode stochastic masking is not applied (inference only).
    n = inputs.shape[0]
    n_classes = params[-1][0].shape[1]
    budget = _vmem_budget_bytes()

    pparams = _pad_params(params, compute_dtype)
    f0_pad = pparams[0][0].shape[0]
    fmax_pad = max([f0_pad] + [p[0].shape[1] for p in pparams])
    isz = jnp.dtype(compute_dtype).itemsize

    if use_fused is None:
        n_pad_f = _round_up(n, 128)
        est = (n_pad_f * n_pad_f * isz
               + n_pad_f * f0_pad * isz
               + sum(2 * p[0].size * isz + p[2].size * 4 for p in pparams)
               + 4 * n_pad_f * fmax_pad * 4)
        use_fused = est <= budget // 2

    if use_fused:
        n_pad = _round_up(n, 128)
        a_p = _pad2d(a_norm, n_pad, n_pad).astype(compute_dtype)
        x_p = _pad2d(inputs, n_pad, f0_pad).astype(compute_dtype)
        out_p = _fused_forward(a_p, x_p, pparams, vmem_limit=budget)
    else:
        tile = 256  # can be raised up to the VMEM budget; 256 is safe on v5e/v6e/v7x
        n_pad = _round_up(n, tile)
        a_p = _pad2d(a_norm, n_pad, n_pad).astype(compute_dtype)
        h = _pad2d(inputs, n_pad, f0_pad).astype(compute_dtype)
        for l, (ws, wn, b) in enumerate(pparams):
            h = sage_conv_tiled(a_p, h, ws, wn, b,
                                apply_relu=(l != len(pparams) - 1),
                                tile_m=tile, tile_k=tile, vmem_limit=budget)
        out_p = h

    return out_p[:n, :n_classes].astype(jnp.float32)


# ----------------------------------------------------------------------- reference
def reference_forward(a_norm, x, params):
    h = x
    for l, (ws, wn, b) in enumerate(params):
        h = h @ ws + (a_norm @ h) @ wn + b
        if l != len(params) - 1:
            h = jnp.maximum(h, 0.0)
    return h


def init_params(key, in_feats, n_hidden, n_classes, n_layers):
    """Deterministic parameter init matching GraphSAGE.__init__ layer structure."""
    dims = [in_feats] + [n_hidden] * n_layers + [n_classes]
    params = []
    for i in range(len(dims) - 1):
        f_in, f_out = dims[i], dims[i + 1]
        key, k1, k2 = jax.random.split(key, 3)
        scale = 1.0 / jnp.sqrt(jnp.float32(f_in))
        w_self = jax.random.uniform(k1, (f_in, f_out), jnp.float32, -scale, scale)
        w_neigh = jax.random.uniform(k2, (f_in, f_out), jnp.float32, -scale, scale)
        bias = jnp.zeros((f_out,), jnp.float32)
        params.append((w_self, w_neigh, bias))
    return params


def _make_graph(key, n, density):
    adj = (jax.random.uniform(key, (n, n)) < density).astype(jnp.float32)
    deg = jnp.maximum(adj.sum(axis=1, keepdims=True), 1.0)
    return adj / deg


if __name__ == "__main__":
    key = jax.random.PRNGKey(0)

    # ---- Test 1: original toy sizes -> fully fused single-kernel path (f32) ----
    N, in_feats, n_hidden, n_classes, n_layers = 32, 16, 32, 8, 2
    key, k_adj, k_x, k_p = jax.random.split(key, 4)
    a_norm = _make_graph(k_adj, N, 0.25)
    x = jax.random.normal(k_x, (N, in_feats), dtype=jnp.float32)
    params = init_params(k_p, in_feats, n_hidden, n_classes, n_layers)

    out = jax.block_until_ready(graphsage_forward(a_norm, x, params))
    ref = reference_forward(a_norm, x, params)
    assert out.shape == (N, n_classes)
    assert jnp.allclose(out, ref, atol=2e-2, rtol=2e-2), \
        float(jnp.max(jnp.abs(out - ref)))

    # ---- Test 2: larger graph -> tiled per-layer path, bf16 inputs / f32 accum ----
    N2, f2, h2, c2 = 512, 96, 128, 10
    key, k_adj2, k_x2, k_p2 = jax.random.split(key, 4)
    a2 = _make_graph(k_adj2, N2, 0.05)
    x2 = jax.random.normal(k_x2, (N2, f2), dtype=jnp.float32)
    params2 = init_params(k_p2, f2, h2, c2, 2)

    out2 = jax.block_until_ready(
        graphsage_forward(a2, x2, params2,
                          compute_dtype=jnp.bfloat16, use_fused=False))
    ref2 = reference_forward(a2, x2, params2)
    assert out2.shape == (N2, c2)
    err = float(jnp.max(jnp.abs(out2 - ref2)))
    tol = 0.05 + 0.05 * float(jnp.max(jnp.abs(ref2)))
    assert err < tol, (err, tol)

    print("KERNEL_OK")
</pallas_src>

<mosaic_0001>
module attributes {stable_mosaic.version = 11 : i64} {
  func.func @_fused_kernel(%arg0: memref<128x128xf32, #tpu.memory_space<vmem>>, %arg1: memref<128x128xf32, #tpu.memory_space<vmem>>, %arg2: memref<128x128xf32, #tpu.memory_space<vmem>>, %arg3: memref<128x128xf32, #tpu.memory_space<vmem>>, %arg4: memref<1x128xf32, #tpu.memory_space<vmem>>, %arg5: memref<128x128xf32, #tpu.memory_space<vmem>>, %arg6: memref<128x128xf32, #tpu.memory_space<vmem>>, %arg7: memref<1x128xf32, #tpu.memory_space<vmem>>, %arg8: memref<128x128xf32, #tpu.memory_space<vmem>>, %arg9: memref<128x128xf32, #tpu.memory_space<vmem>>, %arg10: memref<1x128xf32, #tpu.memory_space<vmem>>, %arg11: memref<128x128xf32, #tpu.memory_space<vmem>>) attributes {dimension_semantics = [], scalar_prefetch = 0 : i64, scratch_operands = 0 : i64, tpu.core_type = #tpu.core_type<tc>} {
    %c0 = arith.constant 0 : index
    %c0_0 = arith.constant 0 : index
    %0 = vector.load %arg0[%c0, %c0_0] : memref<128x128xf32, #tpu.memory_space<vmem>>, vector<128x128xf32>
    %c0_1 = arith.constant 0 : index
    %c0_2 = arith.constant 0 : index
    %1 = vector.load %arg1[%c0_1, %c0_2] : memref<128x128xf32, #tpu.memory_space<vmem>>, vector<128x128xf32>
    %c0_3 = arith.constant 0 : index
    %c0_4 = arith.constant 0 : index
    %2 = vector.load %arg2[%c0_3, %c0_4] : memref<128x128xf32, #tpu.memory_space<vmem>>, vector<128x128xf32>
    %c0_5 = arith.constant 0 : index
    %c0_6 = arith.constant 0 : index
    %3 = vector.load %arg3[%c0_5, %c0_6] : memref<128x128xf32, #tpu.memory_space<vmem>>, vector<128x128xf32>
    %c0_7 = arith.constant 0 : index
    %c0_8 = arith.constant 0 : index
    %4 = vector.load %arg4[%c0_7, %c0_8] : memref<1x128xf32, #tpu.memory_space<vmem>>, vector<1x128xf32>
    %cst = arith.constant dense<0.000000e+00> : vector<128x128xf32>
    %5 = tpu.matmul %1, %3, %cst {dimension_numbers = #tpu.dot_dimension_numbers<[1], [0], [0], [1], [0, 0, 1, 1], [], []>} : vector<128x128xf32>, vector<128x128xf32>, vector<128x128xf32> -> vector<128x128xf32>
    %cst_9 = arith.constant dense<0.000000e+00> : vector<128x128xf32>
    %6 = tpu.matmul %1, %2, %cst_9 {dimension_numbers = #tpu.dot_dimension_numbers<[1], [0], [0], [1], [0, 0, 1, 1], [], []>} : vector<128x128xf32>, vector<128x128xf32>, vector<128x128xf32> -> vector<128x128xf32>
    %cst_10 = arith.constant dense<0.000000e+00> : vector<128x128xf32>
    %7 = tpu.matmul %0, %5, %cst_10 {dimension_numbers = #tpu.dot_dimension_numbers<[1], [0], [0], [1], [0, 0, 1, 1], [], []>} : vector<128x128xf32>, vector<128x128xf32>, vector<128x128xf32> -> vector<128x128xf32>
    %8 = arith.addf %6, %7 : vector<128x128xf32>
    %9 = vector.broadcast %4 : vector<1x128xf32> to vector<128x128xf32>
    %10 = arith.addf %8, %9 : vector<128x128xf32>
    %cst_11 = arith.constant 0.000000e+00 : f32
    %11 = vector.broadcast %cst_11 : f32 to vector<128x128xf32>
    %12 = arith.maximumf %10, %11 : vector<128x128xf32>
    %c0_12 = arith.constant 0 : index
    %c0_13 = arith.constant 0 : index
    %13 = vector.load %arg5[%c0_12, %c0_13] : memref<128x128xf32, #tpu.memory_space<vmem>>, vector<128x128xf32>
    %c0_14 = arith.constant 0 : index
    %c0_15 = arith.constant 0 : index
    %14 = vector.load %arg6[%c0_14, %c0_15] : memref<128x128xf32, #tpu.memory_space<vmem>>, vector<128x128xf32>
    %c0_16 = arith.constant 0 : index
    %c0_17 = arith.constant 0 : index
    %15 = vector.load %arg7[%c0_16, %c0_17] : memref<1x128xf32, #tpu.memory_space<vmem>>, vector<1x128xf32>
    %cst_18 = arith.constant dense<0.000000e+00> : vector<128x128xf32>
    %16 = tpu.matmul %12, %14, %cst_18 {dimension_numbers = #tpu.dot_dimension_numbers<[1], [0], [0], [1], [0, 0, 1, 1], [], []>} : vector<128x128xf32>, vector<128x128xf32>, vector<128x128xf32> -> vector<128x128xf32>
    %cst_19 = arith.constant dense<0.000000e+00> : vector<128x128xf32>
    %17 = tpu.matmul %12, %13, %cst_19 {dimension_numbers = #tpu.dot_dimension_numbers<[1], [0], [0], [1], [0, 0, 1, 1], [], []>} : vector<128x128xf32>, vector<128x128xf32>, vector<128x128xf32> -> vector<128x128xf32>
    %cst_20 = arith.constant dense<0.000000e+00> : vector<128x128xf32>
    %18 = tpu.matmul %0, %16, %cst_20 {dimension_numbers = #tpu.dot_dimension_numbers<[1], [0], [0], [1], [0, 0, 1, 1], [], []>} : vector<128x128xf32>, vector<128x128xf32>, vector<128x128xf32> -> vector<128x128xf32>
    %19 = arith.addf %17, %18 : vector<128x128xf32>
    %20 = vector.broadcast %15 : vector<1x128xf32> to vector<128x128xf32>
    %21 = arith.addf %19, %20 : vector<128x128xf32>
    %cst_21 = arith.constant 0.000000e+00 : f32
    %22 = vector.broadcast %cst_21 : f32 to vector<128x128xf32>
    %23 = arith.maximumf %21, %22 : vector<128x128xf32>
    %c0_22 = arith.constant 0 : index
    %c0_23 = arith.constant 0 : index
    %24 = vector.load %arg8[%c0_22, %c0_23] : memref<128x128xf32, #tpu.memory_space<vmem>>, vector<128x128xf32>
    %c0_24 = arith.constant 0 : index
    %c0_25 = arith.constant 0 : index
    %25 = vector.load %arg9[%c0_24, %c0_25] : memref<128x128xf32, #tpu.memory_space<vmem>>, vector<128x128xf32>
    %c0_26 = arith.constant 0 : index
    %c0_27 = arith.constant 0 : index
    %26 = vector.load %arg10[%c0_26, %c0_27] : memref<1x128xf32, #tpu.memory_space<vmem>>, vector<1x128xf32>
    %cst_28 = arith.constant dense<0.000000e+00> : vector<128x128xf32>
    %27 = tpu.matmul %23, %25, %cst_28 {dimension_numbers = #tpu.dot_dimension_numbers<[1], [0], [0], [1], [0, 0, 1, 1], [], []>} : vector<128x128xf32>, vector<128x128xf32>, vector<128x128xf32> -> vector<128x128xf32>
    %cst_29 = arith.constant dense<0.000000e+00> : vector<128x128xf32>
    %28 = tpu.matmul %23, %24, %cst_29 {dimension_numbers = #tpu.dot_dimension_numbers<[1], [0], [0], [1], [0, 0, 1, 1], [], []>} : vector<128x128xf32>, vector<128x128xf32>, vector<128x128xf32> -> vector<128x128xf32>
    %cst_30 = arith.constant dense<0.000000e+00> : vector<128x128xf32>
    %29 = tpu.matmul %0, %27, %cst_30 {dimension_numbers = #tpu.dot_dimension_numbers<[1], [0], [0], [1], [0, 0, 1, 1], [], []>} : vector<128x128xf32>, vector<128x128xf32>, vector<128x128xf32> -> vector<128x128xf32>
    %30 = arith.addf %28, %29 : vector<128x128xf32>
    %31 = vector.broadcast %26 : vector<1x128xf32> to vector<128x128xf32>
    %32 = arith.addf %30, %31 : vector<128x128xf32>
    %c0_31 = arith.constant 0 : index
    %c0_32 = arith.constant 0 : index
    %33 = vector.load %arg11[%c0_31, %c0_32] : memref<128x128xf32, #tpu.memory_space<vmem>>, vector<128x128xf32>
    tpu.vector_store %arg11[%c0_31, %c0_32], %32 {strides = array<i32>} : memref<128x128xf32, #tpu.memory_space<vmem>>, vector<128x128xf32>,
    return
  }
}

</mosaic_0001>

<bundles_post_ra>
// kernel: tpu_custom_call.1
= control target key start
LH: loop header
LB: loop body
LE: loop exit
PB: predicated region body
PF: predicated region fallthrough
CT: control target
= control target key end

     0   :  { %16 = vsyncpa [#allocation3], 0  ;;  %s3732_s0 = inlined_call_operand.hbm [shape: f32[128,128], index: 0, kind: input, shape index: {}]   ;;  %s3733_s1 = inlined_call_operand.hbm [shape: f32[128,128], index: 1, kind: input, shape index: {}]   ;;  %s3734_s2 = inlined_call_operand.hbm [shape: f32[128,128], index: 2, kind: input, shape index: {}]   ;;  %s3735_s3 = inlined_call_operand.hbm [shape: f32[128,128], index: 3, kind: input, shape index: {}]   ;;  %s3736_s4 = inlined_call_operand.vmem [shape: f32[1,128], index: 4, kind: input, shape index: {}]   ;;  %s3737_s5 = inlined_call_operand.hbm [shape: f32[128,128], index: 5, kind: input, shape index: {}]   ;;  %s3738_s6 = inlined_call_operand.hbm [shape: f32[128,128], index: 6, kind: input, shape index: {}]   ;;  %s3739_s7 = inlined_call_operand.vmem [shape: f32[1,128], index: 7, kind: input, shape index: {}]   ;;  %s3740_s8 = inlined_call_operand.hbm [shape: f32[128,128], index: 8, kind: input, shape index: {}]   ;;  %s3741_s9 = inlined_call_operand.hbm [shape: f32[128,128], index: 9, kind: input, shape index: {}]   ;;  %s3742_s10 = inlined_call_operand.vmem [shape: f32[1,128], index: 10, kind: input, shape index: {}]   ;;  %s3743_s11 = inlined_call_operand.hbm [shape: f32[128,128], index: 11, kind: output, shape index: {}]  }
   0x1   :  { %17 = vsyncpa [#allocation6], 0 }
   0x2   :  { %18 = vsyncpa [#allocation9], 0 }
   0x3   :  { %19 = vsyncpa [#allocation12], 0 }
   0x4   :  { %20 = vsyncpa [#allocation15], 0 }
   0x5   :  { %21 = vsyncpa [#allocation4], 0  ;;  %s3087_s17 = smov [#allocation5]   ;;  %s3088_s19 = smov [#allocation8]  }
   0x6   :  { %s39_s18 = sshll.u32 %s3087_s17, 4  ;;  %s63_s20 = sshll.u32 %s3088_s19, 4  ;;  %s40_s18 = int_to_ptr.vmem [resolvable:$true] %s39_s18  ;;  %s3158_s20 = int_to_ptr.vmem [resolvable:$true] %s63_s20 }
   0x7   :  { %s2877_s23 = scalar_lea.hbm %s3733_s1, 2048 }
   0x8   :  { %p2878_p0 = scmp.ne.s32.totalorder %s3733_s1, %s2877_s23  ;;  %p2881_p1 = scmp.lt.u32.totalorder %s2877_s23, %s3733_s1 }
   0xa   :  { %p2883_p2 = pnand %p2881_p1, %p2878_p0 }
   0xc   :  { %2886 = shalt.err (!%p2883_p2)
}
   0xd   :  { %s2887_s28 = scalar_lea.vmem %s40_s18, 2048  ;;  %p2892_p4 = scmp.lt.s32.totalorder %s40_s18, %s40_s18 }
   0xe   :  { %p2888_p3 = scmp.ne.s32.totalorder %s40_s18, %s2887_s28  ;;  %p2893_p5 = scmp.lt.s32.totalorder %s2887_s28, %s2887_s28 }
  0x10   :  { %p2894_p6 = por %p2893_p5, %p2892_p4 }
  0x12   :  { %p2895_p7 = pnand %p2894_p6, %p2888_p3 }
  0x14   :  { %2898 = shalt.err (!%p2895_p7)
}
  0x15   :  { %s3089_s29 = smov 128   ;;  %s3090_s30 = smov 8  }
  0x16   :  { %45 = dma.hbm_to_vmem [thread:$0]  %s3733_s1, 2048, %s40_s18, [#allocation6], %s3089_s29, %s3089_s29, %s3090_s30  }
  0x17   :  { %s2899_s16 = scalar_lea.hbm %s3735_s3, 2048 }
  0x18   :  { %p2900_p8 = scmp.ne.s32.totalorder %s3735_s3, %s2899_s16  ;;  %p2903_p9 = scmp.lt.u32.totalorder %s2899_s16, %s3735_s3 }
  0x1a   :  { %p2905_p10 = pnand %p2903_p9, %p2900_p8 }
  0x1c   :  { %2908 = shalt.err (!%p2905_p10)
}
  0x1d   :  { %s2909_s23 = scalar_lea.vmem %s3158_s20, 2048  ;;  %p2914_p12 = scmp.lt.s32.totalorder %s3158_s20, %s3158_s20 }
  0x1e   :  { %p2910_p11 = scmp.ne.s32.totalorder %s3158_s20, %s2909_s23  ;;  %p2915_p13 = scmp.lt.s32.totalorder %s2909_s23, %s2909_s23 }
  0x20   :  { %p2916_p0 = por %p2915_p13, %p2914_p12 }
  0x22   :  { %p2917_p1 = pnand %p2916_p0, %p2910_p11 }
  0x24   :  { %2920 = shalt.err (!%p2917_p1)
}
  0x25   :  { %69 = dma.hbm_to_vmem [thread:$0]  %s3735_s3, 2048, %s3158_s20, [#allocation9], %s3089_s29, %s3089_s29, %s3090_s30  }
  0x26   :  { %s3091_s24 = smov [#allocation11]   ;;  %s3092_s26 = smov [#allocation2]  }
  0x27   :  { %s89_s25 = sshll.u32 %s3091_s24, 4  ;;  %s27_s27 = sshll.u32 %s3092_s26, 4  ;;  %s90_s25 = int_to_ptr.vmem [resolvable:$true] %s89_s25  ;;  %s3195_s27 = int_to_ptr.vmem [resolvable:$true] %s27_s27 }
  0x28   :  { %s2921_s13 = scalar_lea.hbm %s3738_s6, 2048 }
  0x29   :  { %p2922_p2 = scmp.ne.s32.totalorder %s3738_s6, %s2921_s13  ;;  %p2925_p3 = scmp.lt.u32.totalorder %s2921_s13, %s3738_s6 }
  0x2b   :  { %p2927_p4 = pnand %p2925_p3, %p2922_p2 }
  0x2d   :  { %2930 = shalt.err (!%p2927_p4)
}
  0x2e   :  { %s2931_s3 = scalar_lea.vmem %s90_s25, 2048  ;;  %p2936_p6 = scmp.lt.s32.totalorder %s90_s25, %s90_s25 }
  0x2f   :  { %p2932_p5 = scmp.ne.s32.totalorder %s90_s25, %s2931_s3  ;;  %p2937_p7 = scmp.lt.s32.totalorder %s2931_s3, %s2931_s3 }
  0x31   :  { %p2938_p8 = por %p2937_p7, %p2936_p6 }
  0x33   :  { %p2939_p9 = pnand %p2938_p8, %p2932_p5 }
  0x35   :  { %2942 = shalt.err (!%p2939_p9)
}
  0x36   :  { %95 = dma.hbm_to_vmem [thread:$0]  %s3738_s6, 2048, %s90_s25, [#allocation12], %s3089_s29, %s3089_s29, %s3090_s30  }
  0x37   :  { %s2943_s23 = scalar_lea.hbm %s3732_s0, 2048 }
  0x38   :  { %p2944_p10 = scmp.ne.s32.totalorder %s3732_s0, %s2943_s23  ;;  %p2947_p11 = scmp.lt.u32.totalorder %s2943_s23, %s3732_s0 }
  0x3a   :  { %p2949_p12 = pnand %p2947_p11, %p2944_p10 }
  0x3c   :  { %2952 = shalt.err (!%p2949_p12)
}
  0x3d   :  { %s2953_s28 = scalar_lea.vmem %s3195_s27, 2048  ;;  %p2958_p0 = scmp.lt.s32.totalorder %s3195_s27, %s3195_s27 }
  0x3e   :  { %p2954_p13 = scmp.ne.s32.totalorder %s3195_s27, %s2953_s28  ;;  %p2959_p1 = scmp.lt.s32.totalorder %s2953_s28, %s2953_s28 }
  0x40   :  { %p2960_p2 = por %p2959_p1, %p2958_p0 }
  0x42   :  { %p2961_p3 = pnand %p2960_p2, %p2954_p13 }
  0x44   :  { %2964 = shalt.err (!%p2961_p3)
}
  0x45   :  { %33 = dma.hbm_to_vmem [thread:$0]  %s3732_s0, 2048, %s3195_s27, [#allocation3], %s3089_s29, %s3089_s29, %s3090_s30  }
  0x46   :  { %s3093_s12 = smov [#allocation7]   ;;  %s3094_s14 = smov [#allocation10]  }
  0x47   :  { %s51_s13 = sshll.u32 %s3093_s12, 4  ;;  %s77_s15 = sshll.u32 %s3094_s14, 4  ;;  %s52_s13 = int_to_ptr.vmem [resolvable:$true] %s51_s13  ;;  %s3232_s15 = int_to_ptr.vmem [resolvable:$true] %s77_s15 }
  0x48   :  { %s2965_s3 = scalar_lea.hbm %s3734_s2, 2048 }
  0x49   :  { %p2966_p4 = scmp.ne.s32.totalorder %s3734_s2, %s2965_s3  ;;  %p2969_p5 = scmp.lt.u32.totalorder %s2965_s3, %s3734_s2 }
  0x4b   :  { %p2971_p6 = pnand %p2969_p5, %p2966_p4 }
  0x4d   :  { %2974 = shalt.err (!%p2971_p6)
}
  0x4e   :  { %s2975_s0 = scalar_lea.vmem %s52_s13, 2048  ;;  %p2980_p8 = scmp.lt.s32.totalorder %s52_s13, %s52_s13 }
  0x4f   :  { %p2976_p7 = scmp.ne.s32.totalorder %s52_s13, %s2975_s0  ;;  %p2981_p9 = scmp.lt.s32.totalorder %s2975_s0, %s2975_s0 }
  0x51   :  { %p2982_p10 = por %p2981_p9, %p2980_p8 }
  0x53   :  { %p2983_p11 = pnand %p2982_p10, %p2976_p7 }
  0x55   :  { %2986 = shalt.err (!%p2983_p11)
}
  0x56   :  { %57 = dma.hbm_to_vmem [thread:$0]  %s3734_s2, 2048, %s52_s13, [#allocation6], %s3089_s29, %s3089_s29, %s3090_s30  }
  0x57   :  { %s2987_s24 = scalar_lea.hbm %s3737_s5, 2048 }
  0x58   :  { %p2988_p12 = scmp.ne.s32.totalorder %s3737_s5, %s2987_s24  ;;  %p2991_p13 = scmp.lt.u32.totalorder %s2987_s24, %s3737_s5 }
  0x5a   :  { %p2993_p0 = pnand %p2991_p13, %p2988_p12 }
  0x5c   :  { %2996 = shalt.err (!%p2993_p0)
}
  0x5d   :  { %s2997_s12 = scalar_lea.vmem %s3232_s15, 2048  ;;  %p3002_p2 = scmp.lt.s32.totalorder %s3232_s15, %s3232_s15 }
  0x5e   :  { %p2998_p1 = scmp.ne.s32.totalorder %s3232_s15, %s2997_s12  ;;  %p3003_p3 = scmp.lt.s32.totalorder %s2997_s12, %s2997_s12 }
  0x60   :  { %p3004_p4 = por %p3003_p3, %p3002_p2 }
  0x62   :  { %p3005_p5 = pnand %p3004_p4, %p2998_p1 }
  0x64   :  { %3008 = shalt.err (!%p3005_p5)
}
  0x65   :  { %83 = dma.hbm_to_vmem [thread:$0]  %s3737_s5, 2048, %s3232_s15, [#allocation9], %s3089_s29, %s3089_s29, %s3090_s30  }
  0x66   :  { %s3095_s14 = smov [#allocation13]   ;;  %s3096_s17 = smov [#allocation14]  }
  0x67   :  { %s103_s16 = sshll.u32 %s3095_s14, 4  ;;  %s115_s3 = sshll.u32 %s3096_s17, 4  ;;  %s104_s16 = int_to_ptr.vmem [resolvable:$true] %s103_s16  ;;  %s3269_s3 = int_to_ptr.vmem [resolvable:$true] %s115_s3 }
  0x68   :  { %s3009_s21 = scalar_lea.hbm %s3740_s8, 2048 }
  0x69   :  { %p3010_p6 = scmp.ne.s32.totalorder %s3740_s8, %s3009_s21  ;;  %p3013_p7 = scmp.lt.u32.totalorder %s3009_s21, %s3740_s8 }
  0x6b   :  { %p3015_p8 = pnand %p3013_p7, %p3010_p6 }
  0x6d   :  { %3018 = shalt.err (!%p3015_p8)
}
  0x6e   :  { %s3019_s5 = scalar_lea.vmem %s104_s16, 2048  ;;  %p3024_p10 = scmp.lt.s32.totalorder %s104_s16, %s104_s16 }
  0x6f   :  { %p3020_p9 = scmp.ne.s32.totalorder %s104_s16, %s3019_s5  ;;  %p3025_p11 = scmp.lt.s32.totalorder %s3019_s5, %s3019_s5 }
  0x71   :  { %p3026_p12 = por %p3025_p11, %p3024_p10 }
  0x73   :  { %p3027_p13 = pnand %p3026_p12, %p3020_p9 }
  0x75   :  { %3030 = shalt.err (!%p3027_p13)
}
  0x76   :  { %109 = dma.hbm_to_vmem [thread:$0]  %s3740_s8, 2048, %s104_s16, [#allocation12], %s3089_s29, %s3089_s29, %s3090_s30  }
  0x77   :  { %s3031_s26 = scalar_lea.hbm %s3741_s9, 2048 }
  0x78   :  { %p3032_p0 = scmp.ne.s32.totalorder %s3741_s9, %s3031_s26  ;;  %p3035_p1 = scmp.lt.u32.totalorder %s3031_s26, %s3741_s9 }
  0x7a   :  { %p3037_p2 = pnand %p3035_p1, %p3032_p0 }
  0x7c   :  { %3040 = shalt.err (!%p3037_p2)
}
  0x7d   :  { %s3041_s2 = scalar_lea.vmem %s3269_s3, 2048  ;;  %p3046_p4 = scmp.lt.s32.totalorder %s3269_s3, %s3269_s3 }
  0x7e   :  { %p3042_p3 = scmp.ne.s32.totalorder %s3269_s3, %s3041_s2  ;;  %p3047_p5 = scmp.lt.s32.totalorder %s3041_s2, %s3041_s2 }
  0x80   :  { %p3048_p6 = por %p3047_p5, %p3046_p4 }
  0x82   :  { %p3049_p7 = pnand %p3048_p6, %p3042_p3 }
  0x84   :  { %3052 = shalt.err (!%p3049_p7)
}
  0x85   :  { %121 = dma.hbm_to_vmem [thread:$0]  %s3741_s9, 2048, %s3269_s3, [#allocation15], %s3089_s29, %s3089_s29, %s3090_s30  }
  0x86   :  { %3075 = dma.done.wait [#allocation3], 2048  }
  0x87   :  { %3076 = vsyncadd [#allocation3], 4294965248 }
  0x88   :  { %3077 = dma.done.wait [#allocation6], 4096  }
  0x89   :  { %3078 = vsyncadd [#allocation6], 4294963200 }
  0x8a   :  { %3079 = dma.done.wait [#allocation9], 4096  }
  0x8b   :  { %3080 = vsyncadd [#allocation9], 4294963200 }
  0x8c   :  { %3081 = dma.done.wait [#allocation12], 4096  }
  0x8d   :  { %3082 = vsyncadd [#allocation12], 4294963200 }
  0x8e   :  { %3083 = dma.done.wait [#allocation15], 2048  }
  0x8f   :  { %3084 = vsyncadd [#allocation15], 4294965248  ;;  %v196_v0 = vld [vmem:[#allocation8] sm:$0xff]  ;;  %v197_v1 = vld [vmem:[#allocation8 + $0x8] sm:$0xff] }
  0x90   :  { %v198_v2 = vld [vmem:[#allocation8 + $0x10] sm:$0xff]  ;;  %v2514_v3 = vpack.c.bf16 %v197_v1, %v196_v0  ;;  %v199_v4 = vld [vmem:[#allocation8 + $0x18] sm:$0xff]  ;;  %v200_v6 = vld [vmem:[#allocation8 + $0x20] sm:$0xff] }
  0x91   :  { %v2518_v5 = vpack.c.bf16 %v199_v4, %v198_v2  ;;  %v201_v7 = vld [vmem:[#allocation8 + $0x28] sm:$0xff]  ;;  %v3306_v9 = vld [vmem:[#allocation5] sm:$0xff]  ;;  %v202_v10 = vld [vmem:[#allocation8 + $0x30] sm:$0xff] }
  0x92   :  { %2515 = vmatprep.subr.bf16.mxu0 %v2514_v3  ;;  %v2522_v8 = vpack.c.bf16 %v201_v7, %v200_v6  ;;  %v203_v11 = vld [vmem:[#allocation8 + $0x38] sm:$0xff]  ;;  %2042 = vmatprep.mubr.f32.mxu0 %v3306_v9  ;;  %v204_v13 = vld [vmem:[#allocation8 + $0x40] sm:$0xff]  ;;  %v205_v14 = vld [vmem:[#allocation8 + $0x48] sm:$0xff] }
  0x93   :  { %2517 = vmatpush3.bf16.msra.mxu0 %v2514_v3  ;;  %v2526_v12 = vpack.c.bf16 %v203_v11, %v202_v10  ;;  %v2530_v15 = vpack.c.bf16 %v205_v14, %v204_v13  ;;  %v206_v16 = vld [vmem:[#allocation8 + $0x50] sm:$0xff]  ;;  %v207_v17 = vld [vmem:[#allocation8 + $0x58] sm:$0xff]  ;;  %v208_v19 = vld [vmem:[#allocation8 + $0x60] sm:$0xff] }
  0x94   :  { %2519 = vmatprep.subr.bf16.mxu0 %v2518_v5  ;;  %v2534_v18 = vpack.c.bf16 %v207_v17, %v206_v16  ;;  %v209_v20 = vld [vmem:[#allocation8 + $0x68] sm:$0xff]  ;;  %v210_v22 = vld [vmem:[#allocation8 + $0x70] sm:$0xff]  ;;  %v211_v23 = vld [vmem:[#allocation8 + $0x78] sm:$0xff] }
  0x95   :  { %v2538_v21 = vpack.c.bf16 %v209_v20, %v208_v19  ;;  %v2542_v24 = vpack.c.bf16 %v211_v23, %v210_v22  ;;  %v3309_v25 = vld [vmem:[#allocation5 + $0x8] sm:$0xff]  ;;  %v3311_v26 = vld [vmem:[#allocation5 + $0x10] sm:$0xff]  ;;  %v3315_v27 = vld [vmem:[#allocation5 + $0x18] sm:$0xff] }
  0x96   :  { %v3317_v28 = vld [vmem:[#allocation5 + $0x20] sm:$0xff]  ;;  %v3321_v29 = vld [vmem:[#allocation5 + $0x28] sm:$0xff]  ;;  %v3323_v30 = vld [vmem:[#allocation5 + $0x30] sm:$0xff] }
  0x97   :  { %2521 = vmatpush3.bf16.msra.mxu0 %v2518_v5  ;;  %v3327_v31 = vld [vmem:[#allocation5 + $0x38] sm:$0xff]  ;;  %v3329_v32 = vld [vmem:[#allocation5 + $0x40] sm:$0xff]  ;;  %v3333_v33 = vld [vmem:[#allocation5 + $0x48] sm:$0xff] }
  0x98   :  { %2523 = vmatprep.subr.bf16.mxu0 %v2522_v8  ;;  %v3335_v34 = vld [vmem:[#allocation5 + $0x50] sm:$0xff]  ;;  %v3339_v35 = vld [vmem:[#allocation5 + $0x58] sm:$0xff]  ;;  %v3341_v36 = vld [vmem:[#allocation5 + $0x60] sm:$0xff] }
  0x99   :  { %v3345_v37 = vld [vmem:[#allocation5 + $0x68] sm:$0xff]  ;;  %v3347_v38 = vld [vmem:[#allocation5 + $0x70] sm:$0xff]  ;;  %v3351_v39 = vld [vmem:[#allocation5 + $0x78] sm:$0xff] }
  0x9a   :  { %v3354_v40 = vld [vmem:[#allocation2] sm:$0xff]  ;;  %v703_v42 = vld [vmem:[#allocation11 + $0x8] sm:$0xff]  ;;  %v704_v43 = vld [vmem:[#allocation11 + $0x10] sm:$0xff] }
  0x9b   :  { %2525 = vmatpush3.bf16.msra.mxu0 %v2522_v8  ;;  %2098 = vmatprep.mubr.f32.mxu1 %v3354_v40  ;;  %v702_v41 = vld [vmem:[#allocation11] sm:$0xff]  ;;  %v705_v45 = vld [vmem:[#allocation11 + $0x18] sm:$0xff]  ;;  %v707_v48 = vld [vmem:[#allocation11 + $0x28] sm:$0xff] }
  0x9c   :  { %2527 = vmatprep.subr.bf16.mxu0 %v2526_v12  ;;  %v2610_v44 = vpack.c.bf16 %v703_v42, %v702_v41  ;;  %v2614_v46 = vpack.c.bf16 %v705_v45, %v704_v43  ;;  %v706_v47 = vld [vmem:[#allocation11 + $0x20] sm:$0xff]  ;;  %v708_v50 = vld [vmem:[#allocation11 + $0x30] sm:$0xff]  ;;  %v709_v51 = vld [vmem:[#allocation11 + $0x38] sm:$0xff] }
  0x9d   :  { %v2618_v49 = vpack.c.bf16 %v707_v48, %v706_v47  ;;  %v2622_v52 = vpack.c.bf16 %v709_v51, %v708_v50  ;;  %v710_v53 = vld [vmem:[#allocation11 + $0x40] sm:$0xff]  ;;  %v711_v54 = vld [vmem:[#allocation11 + $0x48] sm:$0xff]  ;;  %v712_v56 = vld [vmem:[#allocation11 + $0x50] sm:$0xff] }
  0x9e   :  { %v2626_v55 = vpack.c.bf16 %v711_v54, %v710_v53  ;;  %v713_v57 = vld [vmem:[#allocation11 + $0x58] sm:$0xff]  ;;  %v714_v59 = vld [vmem:[#allocation11 + $0x60] sm:$0xff]  ;;  %v715_v60 = vld [vmem:[#allocation11 + $0x68] sm:$0xff] }
  0x9f   :  { %2529 = vmatpush3.bf16.msra.mxu0 %v2526_v12  ;;  %v2630_v58 = vpack.c.bf16 %v713_v57, %v712_v56  ;;  %v2634_v61 = vpack.c.bf16 %v715_v60, %v714_v59  ;;  %v180_v20 = vld [vmem:[#allocation7] sm:$0xff]  ;;  %v182_v42 = vld [vmem:[#allocation7 + $0x10] sm:$0xff]  ;;  %v183_v43 = vld [vmem:[#allocation7 + $0x18] sm:$0xff] }
  0xa0   :  { %2531 = vmatprep.subr.bf16.mxu0 %v2530_v15  ;;  %v3359_v45 = vld [vmem:[#allocation2 + $0x10] sm:$0xff]  ;;  %v184_v47 = vld [vmem:[#allocation7 + $0x20] sm:$0xff]  ;;  %v185_v48 = vld [vmem:[#allocation7 + $0x28] sm:$0xff] }
  0xa1   :  { %v3365_v50 = vld [vmem:[#allocation2 + $0x20] sm:$0xff]  ;;  %v2586_v51 = vpack.c.bf16 %v185_v48, %v184_v47  ;;  %v187_v53 = vld [vmem:[#allocation7 + $0x38] sm:$0xff]  ;;  %v3369_v54 = vld [vmem:[#allocation2 + $0x28] sm:$0xff] }
  0xa2   :  { %v188_v57 = vld [vmem:[#allocation7 + $0x40] sm:$0xff]  ;;  %v3375_v59 = vld [vmem:[#allocation2 + $0x38] sm:$0xff] }
  0xa3   :  { %2533 = vmatpush3.bf16.msra.mxu0 %v2530_v15  ;;  %v3377_v60 = vld [vmem:[#allocation2 + $0x40] sm:$0xff] }
  0xa4   :  { %2535 = vmatprep.subr.bf16.mxu0 %v2534_v18 }
  0xa7   :  { %2537 = vmatpush3.bf16.msra.mxu0 %v2534_v18 }
  0xa8   :  { %2539 = vmatprep.subr.bf16.mxu0 %v2538_v21 }
  0xab   :  { %2541 = vmatpush3.bf16.msra.mxu0 %v2538_v21  ;;  %v181_v21 = vld [vmem:[#allocation7 + $0x8] sm:$0xff] }
  0xac   :  { %2543 = vmatprep.subr.bf16.mxu0 %v2542_v24  ;;  %v2578_v41 = vpack.c.bf16 %v181_v21, %v180_v20 }
  0xaf   :  { %2545 = vmatpush3.bf16.msra.mxu0 %v2542_v24 }
  0xb0   :  { %2611 = vmatprep.subr.bf16.mxu0 %v2610_v44 }
  0xb2   :  { %2043 = vmatmul.mubr.f32.vlgmr.msra.gmra.mrb[0].mxu0 %v3309_v25 }
  0xb3   :  { %2045 = vmatprep.mubr.f32.mxu0 %v3311_v26  ;;  %2613 = vmatpush3.bf16.msra.mxu0 %v2610_v44  ;;  %v3357_v44 = vld [vmem:[#allocation2 + $0x8] sm:$0xff] }
  0xb4   :  { %2615 = vmatprep.subr.bf16.mxu0 %v2614_v46 }
  0xb6   :  { %2046 = vmatmul.mubr.f32.gmra.mrb[2].mxu0 %v3315_v27 }
  0xb7   :  { %2048 = vmatprep.mubr.f32.mxu0 %v3317_v28  ;;  %2617 = vmatpush3.bf16.msra.mxu0 %v2614_v46  ;;  %v2582_v46 = vpack.c.bf16 %v183_v43, %v182_v42 }
  0xb8   :  { %2619 = vmatprep.subr.bf16.mxu0 %v2618_v49 }
  0xba   :  { %2049 = vmatmul.mubr.f32.gmra.mrb[4].mxu0 %v3321_v29 }
  0xbb   :  { %2051 = vmatprep.mubr.f32.mxu0 %v3323_v30  ;;  %2621 = vmatpush3.bf16.msra.mxu0 %v2618_v49  ;;  %v3363_v49 = vld [vmem:[#allocation2 + $0x18] sm:$0xff] }
  0xbc   :  { %2623 = vmatprep.subr.bf16.mxu0 %v2622_v52 }
  0xbe   :  { %2052 = vmatmul.mubr.f32.gmra.mrb[6].mxu0 %v3327_v31 }
  0xbf   :  { %2054 = vmatprep.mubr.f32.mxu0 %v3329_v32  ;;  %2625 = vmatpush3.bf16.msra.mxu0 %v2622_v52  ;;  %v186_v52 = vld [vmem:[#allocation7 + $0x30] sm:$0xff] }
  0xc0   :  { %2627 = vmatprep.subr.bf16.mxu0 %v2626_v55  ;;  %v2590_v56 = vpack.c.bf16 %v187_v53, %v186_v52 }
  0xc2   :  { %2055 = vmatmul.mubr.f32.gmra.mrb[8].mxu0 %v3333_v33 }
  0xc3   :  { %2057 = vmatprep.mubr.f32.mxu0 %v3335_v34  ;;  %2629 = vmatpush3.bf16.msra.mxu0 %v2626_v55  ;;  %v3371_v55 = vld [vmem:[#allocation2 + $0x30] sm:$0xff] }
  0xc4   :  { %2631 = vmatprep.subr.bf16.mxu0 %v2630_v58 }
  0xc6   :  { %2058 = vmatmul.mubr.f32.gmra.mrb[10].mxu0 %v3339_v35 }
  0xc7   :  { %2060 = vmatprep.mubr.f32.mxu0 %v3341_v36  ;;  %2633 = vmatpush3.bf16.msra.mxu0 %v2630_v58  ;;  %v189_v58 = vld [vmem:[#allocation7 + $0x48] sm:$0xff] }
  0xc8   :  { %2635 = vmatprep.subr.bf16.mxu0 %v2634_v61 }
  0xca   :  { %2061 = vmatmul.mubr.f32.gmra.mrb[12].mxu0 %v3345_v37 }
  0xcb   :  { %2063 = vmatprep.mubr.f32.mxu0 %v3347_v38  ;;  %2637 = vmatpush3.bf16.msra.mxu0 %v2634_v61  ;;  %v2594_v61 = vpack.c.bf16 %v189_v58, %v188_v57 }
  0xce   :  { %2064 = vmatmul.mubr.f32.gmra.mrb[14].mxu0 %v3351_v39 }
 0x185   :  { %v2044_v62 = vpop.f32.mrb[0].mxu0 }
 0x186   :  { %v279_v63 = vpop.f32.mrb[1].mxu0 }
 0x187   :  { %v2546_v0 = vpack.c.bf16 %v2044_v62, %v279_v63  ;;  %v190_v62 = vld [vmem:[#allocation7 + $0x50] sm:$0xff]  ;;  %v191_v63 = vld [vmem:[#allocation7 + $0x58] sm:$0xff] }
 0x189   :  { %v2047_v1 = vpop.f32.mrb[2].mxu0  ;;  %2547 = vmatprep.subr.bf16.mxu1 %v2546_v0 }
 0x18a   :  { %v289_v2 = vpop.f32.mrb[3].mxu0  ;;  %2549 = vmatpush3.bf16.msra.mxu1 %v2546_v0  ;;  %v3381_v0 = vld [vmem:[#allocation2 + $0x48] sm:$0xff] }
 0x18b   :  { %v2550_v3 = vpack.c.bf16 %v2047_v1, %v289_v2  ;;  %v3383_v1 = vld [vmem:[#allocation2 + $0x50] sm:$0xff]  ;;  %v2598_v2 = vpack.c.bf16 %v191_v63, %v190_v62 }
 0x18d   :  { %v2050_v4 = vpop.f32.mrb[4].mxu0  ;;  %2551 = vmatprep.subr.bf16.mxu1 %v2550_v3 }
 0x18e   :  { %v299_v5 = vpop.f32.mrb[5].mxu0  ;;  %2553 = vmatpush3.bf16.msra.mxu1 %v2550_v3  ;;  %v192_v3 = vld [vmem:[#allocation7 + $0x60] sm:$0xff] }
 0x18f   :  { %v2554_v6 = vpack.c.bf16 %v2050_v4, %v299_v5  ;;  %v193_v4 = vld [vmem:[#allocation7 + $0x68] sm:$0xff]  ;;  %v3387_v5 = vld [vmem:[#allocation2 + $0x58] sm:$0xff] }
 0x191   :  { %v2053_v7 = vpop.f32.mrb[6].mxu0  ;;  %2555 = vmatprep.subr.bf16.mxu1 %v2554_v6 }
 0x192   :  { %v309_v8 = vpop.f32.mrb[7].mxu0  ;;  %2557 = vmatpush3.bf16.msra.mxu1 %v2554_v6  ;;  %v3389_v6 = vld [vmem:[#allocation2 + $0x60] sm:$0xff] }
 0x193   :  { %v2558_v10 = vpack.c.bf16 %v2053_v7, %v309_v8  ;;  %v2602_v7 = vpack.c.bf16 %v193_v4, %v192_v3  ;;  %v194_v8 = vld [vmem:[#allocation7 + $0x70] sm:$0xff] }
 0x195   :  { %v2056_v11 = vpop.f32.mrb[8].mxu0  ;;  %2559 = vmatprep.subr.bf16.mxu1 %v2558_v10 }
 0x196   :  { %v319_v12 = vpop.f32.mrb[9].mxu0  ;;  %2561 = vmatpush3.bf16.msra.mxu1 %v2558_v10  ;;  %v195_v10 = vld [vmem:[#allocation7 + $0x78] sm:$0xff] }
 0x197   :  { %v2562_v13 = vpack.c.bf16 %v2056_v11, %v319_v12  ;;  %v3393_v11 = vld [vmem:[#allocation2 + $0x68] sm:$0xff]  ;;  %v3395_v12 = vld [vmem:[#allocation2 + $0x70] sm:$0xff] }
 0x199   :  { %v2059_v14 = vpop.f32.mrb[10].mxu0  ;;  %2563 = vmatprep.subr.bf16.mxu1 %v2562_v13 }
 0x19a   :  { %v329_v15 = vpop.f32.mrb[11].mxu0  ;;  %2565 = vmatpush3.bf16.msra.mxu1 %v2562_v13  ;;  %v2606_v13 = vpack.c.bf16 %v195_v10, %v194_v8 }
 0x19b   :  { %v2566_v16 = vpack.c.bf16 %v2059_v14, %v329_v15  ;;  %v3399_v14 = vld [vmem:[#allocation2 + $0x78] sm:$0xff] }
 0x19d   :  { %v2062_v17 = vpop.f32.mrb[12].mxu0  ;;  %2567 = vmatprep.subr.bf16.mxu1 %v2566_v16 }
 0x19e   :  { %v339_v18 = vpop.f32.mrb[13].mxu0  ;;  %2569 = vmatpush3.bf16.msra.mxu1 %v2566_v16 }
 0x19f   :  { %v2570_v19 = vpack.c.bf16 %v2062_v17, %v339_v18 }
 0x1a1   :  { %v2065_v22 = vpop.f32.mrb[14].mxu0  ;;  %2571 = vmatprep.subr.bf16.mxu1 %v2570_v19 }
 0x1a2   :  { %v349_v23 = vpop.f32.mrb[15].mxu0  ;;  %2573 = vmatpush3.bf16.msra.mxu1 %v2570_v19 }
 0x1a3   :  { %v2574_v24 = vpack.c.bf16 %v2065_v22, %v349_v23 }
 0x1a5   :  { %2575 = vmatprep.subr.bf16.mxu1 %v2574_v24 }
 0x1a6   :  { %2577 = vmatpush3.bf16.msra.mxu1 %v2574_v24 }
 0x1a7   :  { %2579 = vmatprep.subr.bf16.mxu1 %v2578_v41 }
 0x1a9   :  { %2099 = vmatmul.mubr.f32.vlgmr.msra.gmra.mrb[0].mxu1 %v3357_v44 }
 0x1aa   :  { %2581 = vmatpush3.bf16.msra.mxu1 %v2578_v41  ;;  %2101 = vmatprep.mubr.f32.mxu1 %v3359_v45 }
 0x1ab   :  { %2583 = vmatprep.subr.bf16.mxu1 %v2582_v46 }
 0x1ad   :  { %2102 = vmatmul.mubr.f32.gmra.mrb[2].mxu1 %v3363_v49 }
 0x1ae   :  { %2585 = vmatpush3.bf16.msra.mxu1 %v2582_v46  ;;  %2104 = vmatprep.mubr.f32.mxu1 %v3365_v50 }
 0x1af   :  { %2587 = vmatprep.subr.bf16.mxu1 %v2586_v51 }
 0x1b1   :  { %2105 = vmatmul.mubr.f32.gmra.mrb[4].mxu1 %v3369_v54 }
 0x1b2   :  { %2589 = vmatpush3.bf16.msra.mxu1 %v2586_v51  ;;  %2107 = vmatprep.mubr.f32.mxu1 %v3371_v55 }
 0x1b3   :  { %2591 = vmatprep.subr.bf16.mxu1 %v2590_v56 }
 0x1b5   :  { %2108 = vmatmul.mubr.f32.gmra.mrb[6].mxu1 %v3375_v59 }
 0x1b6   :  { %2593 = vmatpush3.bf16.msra.mxu1 %v2590_v56  ;;  %2110 = vmatprep.mubr.f32.mxu1 %v3377_v60 }
 0x1b7   :  { %2595 = vmatprep.subr.bf16.mxu1 %v2594_v61 }
 0x1b9   :  { %2111 = vmatmul.mubr.f32.gmra.mrb[8].mxu1 %v3381_v0 }
 0x1ba   :  { %2597 = vmatpush3.bf16.msra.mxu1 %v2594_v61  ;;  %2113 = vmatprep.mubr.f32.mxu1 %v3383_v1 }
 0x1bb   :  { %2599 = vmatprep.subr.bf16.mxu1 %v2598_v2 }
 0x1bd   :  { %2114 = vmatmul.mubr.f32.gmra.mrb[10].mxu1 %v3387_v5 }
 0x1be   :  { %2601 = vmatpush3.bf16.msra.mxu1 %v2598_v2  ;;  %2116 = vmatprep.mubr.f32.mxu1 %v3389_v6 }
 0x1bf   :  { %2603 = vmatprep.subr.bf16.mxu1 %v2602_v7 }
 0x1c1   :  { %2117 = vmatmul.mubr.f32.gmra.mrb[12].mxu1 %v3393_v11 }
 0x1c2   :  { %2605 = vmatpush3.bf16.msra.mxu1 %v2602_v7  ;;  %2119 = vmatprep.mubr.f32.mxu1 %v3395_v12 }
 0x1c3   :  { %2607 = vmatprep.subr.bf16.mxu1 %v2606_v13 }
 0x1c5   :  { %2120 = vmatmul.mubr.f32.gmra.mrb[14].mxu1 %v3399_v14 }
 0x1c6   :  { %2609 = vmatpush3.bf16.msra.mxu1 %v2606_v13  ;;  %2154 = vmatprep.mubr.f32.mxu1 %v3306_v9  ;;  %v716_v9 = vld [vmem:[#allocation11 + $0x70] sm:$0xff] }
 0x1c9   :  { %2155 = vmatmul.mubr.f32.vlgmr.msra.gmra.mrb[0].mxu1 %v3309_v25  ;;  %v717_v25 = vld [vmem:[#allocation11 + $0x78] sm:$0xff] }
 0x1ca   :  { %2157 = vmatprep.mubr.f32.mxu1 %v3311_v26  ;;  %v2638_v26 = vpack.c.bf16 %v717_v25, %v716_v9 }
 0x1cc   :  { %2639 = vmatprep.subr.bf16.mxu0 %v2638_v26 }
 0x1cd   :  { %2158 = vmatmul.mubr.f32.gmra.mrb[2].mxu1 %v3315_v27  ;;  %2641 = vmatpush3.bf16.msra.mxu0 %v2638_v26  ;;  %v1719_v27 = vld [vmem:[%s3736_s4] ss:$0 sm:$0xff] }
 0x1ce   :  { %2160 = vmatprep.mubr.f32.mxu1 %v3317_v28 }
 0x1d1   :  { %2161 = vmatmul.mubr.f32.gmra.mrb[4].mxu1 %v3321_v29 }
 0x1d2   :  { %2163 = vmatprep.mubr.f32.mxu1 %v3323_v30 }
 0x1d5   :  { %2164 = vmatmul.mubr.f32.gmra.mrb[6].mxu1 %v3327_v31 }
 0x1d6   :  { %2166 = vmatprep.mubr.f32.mxu1 %v3329_v32 }
 0x1d9   :  { %2167 = vmatmul.mubr.f32.gmra.mrb[8].mxu1 %v3333_v33 }
 0x1da   :  { %2169 = vmatprep.mubr.f32.mxu1 %v3335_v34 }
 0x1dd   :  { %2170 = vmatmul.mubr.f32.gmra.mrb[10].mxu1 %v3339_v35 }
 0x1de   :  { %2172 = vmatprep.mubr.f32.mxu1 %v3341_v36 }
 0x1e1   :  { %2173 = vmatmul.mubr.f32.gmra.mrb[12].mxu1 %v3345_v37 }
 0x1e2   :  { %2175 = vmatprep.mubr.f32.mxu1 %v3347_v38 }
 0x1e5   :  { %2176 = vmatmul.mubr.f32.gmra.mrb[14].mxu1 %v3351_v39 }
 0x29c   :  { %v2156_v28 = vpop.f32.mrb[0].mxu1 }
 0x29d   :  { %v3421_v29 = vadd.f32 %v2156_v28, %v1719_v27  ;;  %v569_v30 = vpop.f32.mrb[1].mxu1 }
 0x29e   :  { %v3423_v31 = vadd.f32 %v1719_v27, %v569_v30  ;;  %v1209_v30 = vld [vmem:[#allocation14 + $0x8] sm:$0xff] }
 0x29f   :  { %v671_v34 = vmax.f32 %v3421_v29, 0.0 }
 0x2a0   :  { %v670_v32 = vmax.f32 %v3423_v31, 0.0  ;;  %v2159_v33 = vpop.f32.mrb[2].mxu1  ;;  %v1198_v31 = vld [vmem:[#allocation13 + $0x30] sm:$0xff] }
 0x2a1   :  { %v3427_v35 = vadd.f32 %v2159_v33, %v1719_v27  ;;  %v579_v36 = vpop.f32.mrb[3].mxu1 }
 0x2a2   :  { %v3429_v37 = vadd.f32 %v1719_v27, %v579_v36  ;;  %2210 = vmatprep.mubr.f32.mxu0 %v670_v32  ;;  %v1210_v36 = vld [vmem:[#allocation14 + $0x10] sm:$0xff] }
 0x2a3   :  { %2211 = vmatmul.mubr.f32.vlgmr.msra.gmra.mrb[16].mxu0 %v671_v34  ;;  %v673_v15 = vmax.f32 %v3427_v35, 0.0 }
 0x2a4   :  { %v672_v38 = vmax.f32 %v3429_v37, 0.0  ;;  %v2162_v39 = vpop.f32.mrb[4].mxu1  ;;  %v1201_v37 = vld [vmem:[#allocation13 + $0x48] sm:$0xff] }
 0x2a5   :  { %v3437_v16 = vadd.f32 %v2162_v39, %v1719_v27  ;;  %v589_v17 = vpop.f32.mrb[5].mxu1  ;;  %v1211_v39 = vld [vmem:[#allocation14 + $0x18] sm:$0xff] }
 0x2a6   :  { %v3439_v18 = vadd.f32 %v1719_v27, %v589_v17  ;;  %2213 = vmatprep.mubr.f32.mxu0 %v672_v38  ;;  %v2710_v17 = vpack.c.bf16 %v1211_v39, %v1210_v36  ;;  %v1220_v36 = vld [vmem:[#allocation14 + $0x60] sm:$0xff]  ;;  %v1221_v39 = vld [vmem:[#allocation14 + $0x68] sm:$0xff] }
 0x2a7   :  { %2214 = vmatmul.mubr.f32.gmra.mrb[18].mxu0 %v673_v15  ;;  %v675_v21 = vmax.f32 %v3437_v16, 0.0 }
 0x2a8   :  { %v674_v19 = vmax.f32 %v3439_v18, 0.0  ;;  %v2165_v20 = vpop.f32.mrb[6].mxu1  ;;  %v1204_v18 = vld [vmem:[#allocation13 + $0x60] sm:$0xff] }
 0x2a9   :  { %v3447_v22 = vadd.f32 %v2165_v20, %v1719_v27  ;;  %v599_v23 = vpop.f32.mrb[7].mxu1  ;;  %v1212_v20 = vld [vmem:[#allocation14 + $0x20] sm:$0xff] }
 0x2aa   :  { %v3449_v24 = vadd.f32 %v1719_v27, %v599_v23  ;;  %2216 = vmatprep.mubr.f32.mxu0 %v674_v19  ;;  %v1213_v23 = vld [vmem:[#allocation14 + $0x28] sm:$0xff] }
 0x2ab   :  { %2217 = vmatmul.mubr.f32.gmra.mrb[20].mxu0 %v675_v21  ;;  %v677_v43 = vmax.f32 %v3447_v22, 0.0  ;;  %v1222_v22 = vld [vmem:[#allocation14 + $0x70] sm:$0xff] }
 0x2ac   :  { %v676_v41 = vmax.f32 %v3449_v24, 0.0  ;;  %v2168_v42 = vpop.f32.mrb[8].mxu1  ;;  %v1223_v24 = vld [vmem:[#allocation14 + $0x78] sm:$0xff] }
 0x2ad   :  { %v3457_v46 = vadd.f32 %v2168_v42, %v1719_v27  ;;  %v609_v47 = vpop.f32.mrb[9].mxu1  ;;  %v2714_v42 = vpack.c.bf16 %v1213_v23, %v1212_v20 }
 0x2ae   :  { %v3459_v48 = vadd.f32 %v1719_v27, %v609_v47  ;;  %2219 = vmatprep.mubr.f32.mxu0 %v676_v41  ;;  %v1214_v47 = vld [vmem:[#allocation14 + $0x30] sm:$0xff] }
 0x2af   :  { %2220 = vmatmul.mubr.f32.gmra.mrb[22].mxu0 %v677_v43  ;;  %v679_v53 = vmax.f32 %v3457_v46, 0.0  ;;  %v1207_v46 = vld [vmem:[#allocation13 + $0x78] sm:$0xff] }
 0x2b0   :  { %v678_v51 = vmax.f32 %v3459_v48, 0.0  ;;  %v2171_v52 = vpop.f32.mrb[10].mxu1 }
 0x2b1   :  { %v3467_v56 = vadd.f32 %v2171_v52, %v1719_v27  ;;  %v619_v57 = vpop.f32.mrb[11].mxu1  ;;  %v1215_v52 = vld [vmem:[#allocation14 + $0x38] sm:$0xff] }
 0x2b2   :  { %v3469_v58 = vadd.f32 %v1719_v27, %v619_v57  ;;  %2222 = vmatprep.mubr.f32.mxu0 %v678_v51  ;;  %v2718_v57 = vpack.c.bf16 %v1215_v52, %v1214_v47 }
 0x2b3   :  { %2223 = vmatmul.mubr.f32.gmra.mrb[24].mxu0 %v679_v53  ;;  %v681_v63 = vmax.f32 %v3467_v56, 0.0 }
 0x2b4   :  { %v680_v61 = vmax.f32 %v3469_v58, 0.0  ;;  %v2174_v62 = vpop.f32.mrb[12].mxu1 }
 0x2b5   :  { %v3477_v2 = vadd.f32 %v2174_v62, %v1719_v27  ;;  %v629_v3 = vpop.f32.mrb[13].mxu1  ;;  %v1216_v62 = vld [vmem:[#allocation14 + $0x40] sm:$0xff] }
 0x2b6   :  { %v3479_v4 = vadd.f32 %v1719_v27, %v629_v3  ;;  %2225 = vmatprep.mubr.f32.mxu0 %v680_v61  ;;  %v1217_v3 = vld [vmem:[#allocation14 + $0x48] sm:$0xff] }
 0x2b7   :  { %2226 = vmatmul.mubr.f32.gmra.mrb[26].mxu0 %v681_v63  ;;  %v683_v10 = vmax.f32 %v3477_v2, 0.0 }
 0x2b8   :  { %v682_v7 = vmax.f32 %v3479_v4, 0.0  ;;  %v2177_v8 = vpop.f32.mrb[14].mxu1 }
 0x2b9   :  { %v3487_v13 = vadd.f32 %v2177_v8, %v1719_v27  ;;  %v639_v9 = vpop.f32.mrb[15].mxu1  ;;  %v2722_v8 = vpack.c.bf16 %v1217_v3, %v1216_v62 }
 0x2ba   :  { %v3489_v25 = vadd.f32 %v1719_v27, %v639_v9  ;;  %2228 = vmatprep.mubr.f32.mxu0 %v682_v7  ;;  %v1208_v27 = vld [vmem:[#allocation14] sm:$0xff]  ;;  %v1218_v9 = vld [vmem:[#allocation14 + $0x50] sm:$0xff] }
 0x2bb   :  { %2229 = vmatmul.mubr.f32.gmra.mrb[28].mxu0 %v683_v10  ;;  %v685_v28 = vmax.f32 %v3487_v13, 0.0  ;;  %v2706_v33 = vpack.c.bf16 %v1209_v30, %v1208_v27  ;;  %v1219_v27 = vld [vmem:[#allocation14 + $0x58] sm:$0xff] }
 0x2bc   :  { %v684_v26 = vmax.f32 %v3489_v25, 0.0  ;;  %v2726_v30 = vpack.c.bf16 %v1219_v27, %v1218_v9 }
 0x2bd   :  { %2707 = vmatprep.subr.bf16.mxu1 %v2706_v33 }
 0x2be   :  { %2231 = vmatprep.mubr.f32.mxu0 %v684_v26  ;;  %2709 = vmatpush3.bf16.msra.mxu1 %v2706_v33  ;;  %v2730_v33 = vpack.c.bf16 %v1221_v39, %v1220_v36 }
 0x2bf   :  { %2232 = vmatmul.mubr.f32.gmra.mrb[30].mxu0 %v685_v28  ;;  %2711 = vmatprep.subr.bf16.mxu1 %v2710_v17 }
 0x2c0   :  { %2266 = vmatprep.mubr.f32.mxu0 %v3354_v40 }
 0x2c2   :  { %2713 = vmatpush3.bf16.msra.mxu1 %v2710_v17 }
 0x2c3   :  { %2715 = vmatprep.subr.bf16.mxu1 %v2714_v42 }
 0x2c6   :  { %2717 = vmatpush3.bf16.msra.mxu1 %v2714_v42 }
 0x2c7   :  { %2719 = vmatprep.subr.bf16.mxu1 %v2718_v57 }
 0x2ca   :  { %2721 = vmatpush3.bf16.msra.mxu1 %v2718_v57 }
 0x2cb   :  { %2723 = vmatprep.subr.bf16.mxu1 %v2722_v8 }
 0x2ce   :  { %2725 = vmatpush3.bf16.msra.mxu1 %v2722_v8 }
 0x2cf   :  { %2727 = vmatprep.subr.bf16.mxu1 %v2726_v30 }
 0x2d2   :  { %2729 = vmatpush3.bf16.msra.mxu1 %v2726_v30 }
 0x2d3   :  { %2731 = vmatprep.subr.bf16.mxu1 %v2730_v33 }
 0x2d6   :  { %2733 = vmatpush3.bf16.msra.mxu1 %v2730_v33 }
 0x376   :  { %v2212_v17 = vpop.f32.mrb[16].mxu0 }
 0x377   :  { %v785_v20 = vpop.f32.mrb[17].mxu0 }
 0x378   :  { %v2642_v23 = vpack.c.bf16 %v2212_v17, %v785_v20 }
 0x37a   :  { %v2215_v47 = vpop.f32.mrb[18].mxu0  ;;  %2643 = vmatprep.subr.bf16.mxu0 %v2642_v23 }
 0x37b   :  { %v795_v42 = vpop.f32.mrb[19].mxu0  ;;  %2645 = vmatpush3.bf16.msra.mxu0 %v2642_v23 }
 0x37c   :  { %v2646_v52 = vpack.c.bf16 %v2215_v47, %v795_v42 }
 0x37e   :  { %v2218_v62 = vpop.f32.mrb[20].mxu0  ;;  %2647 = vmatprep.subr.bf16.mxu0 %v2646_v52 }
 0x37f   :  { %v805_v57 = vpop.f32.mrb[21].mxu0  ;;  %2649 = vmatpush3.bf16.msra.mxu0 %v2646_v52  ;;  %v686_v52 = vld [vmem:[#allocation10] sm:$0xff] }
 0x380   :  { %v2650_v3 = vpack.c.bf16 %v2218_v62, %v805_v57  ;;  %v687_v62 = vld [vmem:[#allocation10 + $0x8] sm:$0xff] }
 0x382   :  { %v2221_v9 = vpop.f32.mrb[22].mxu0  ;;  %2651 = vmatprep.subr.bf16.mxu0 %v2650_v3 }
 0x383   :  { %v815_v8 = vpop.f32.mrb[23].mxu0  ;;  %2653 = vmatpush3.bf16.msra.mxu0 %v2650_v3 }
 0x384   :  { %v2654_v27 = vpack.c.bf16 %v2221_v9, %v815_v8  ;;  %v2674_v8 = vpack.c.bf16 %v687_v62, %v686_v52  ;;  %v695_v52 = vld [vmem:[#allocation10 + $0x48] sm:$0xff] }
 0x386   :  { %v2224_v30 = vpop.f32.mrb[24].mxu0  ;;  %2655 = vmatprep.subr.bf16.mxu0 %v2654_v27 }
 0x387   :  { %v825_v36 = vpop.f32.mrb[25].mxu0  ;;  %2657 = vmatpush3.bf16.msra.mxu0 %v2654_v27  ;;  %v688_v27 = vld [vmem:[#allocation10 + $0x10] sm:$0xff] }
 0x388   :  { %v2658_v39 = vpack.c.bf16 %v2224_v30, %v825_v36  ;;  %v689_v30 = vld [vmem:[#allocation10 + $0x18] sm:$0xff] }
 0x389   :  { %v2678_v36 = vpack.c.bf16 %v689_v30, %v688_v27  ;;  %v699_v27 = vld [vmem:[#allocation10 + $0x68] sm:$0xff] }
 0x38a   :  { %v2227_v33 = vpop.f32.mrb[26].mxu0  ;;  %2659 = vmatprep.subr.bf16.mxu0 %v2658_v39 }
 0x38b   :  { %v835_v17 = vpop.f32.mrb[27].mxu0  ;;  %2661 = vmatpush3.bf16.msra.mxu0 %v2658_v39  ;;  %v690_v39 = vld [vmem:[#allocation10 + $0x20] sm:$0xff] }
 0x38c   :  { %v2662_v20 = vpack.c.bf16 %v2227_v33, %v835_v17  ;;  %v691_v33 = vld [vmem:[#allocation10 + $0x28] sm:$0xff] }
 0x38d   :  { %v2682_v17 = vpack.c.bf16 %v691_v33, %v690_v39  ;;  %v701_v39 = vld [vmem:[#allocation10 + $0x78] sm:$0xff] }
 0x38e   :  { %v2230_v23 = vpop.f32.mrb[28].mxu0  ;;  %2663 = vmatprep.subr.bf16.mxu0 %v2662_v20 }
 0x38f   :  { %v845_v47 = vpop.f32.mrb[29].mxu0  ;;  %2665 = vmatpush3.bf16.msra.mxu0 %v2662_v20  ;;  %v692_v20 = vld [vmem:[#allocation10 + $0x30] sm:$0xff] }
 0x390   :  { %v2666_v42 = vpack.c.bf16 %v2230_v23, %v845_v47  ;;  %v693_v23 = vld [vmem:[#allocation10 + $0x38] sm:$0xff] }
 0x391   :  { %v2686_v47 = vpack.c.bf16 %v693_v23, %v692_v20  ;;  %v1193_v20 = vld [vmem:[#allocation13 + $0x8] sm:$0xff] }
 0x392   :  { %v2233_v57 = vpop.f32.mrb[30].mxu0  ;;  %2667 = vmatprep.subr.bf16.mxu0 %v2666_v42 }
 0x393   :  { %v855_v3 = vpop.f32.mrb[31].mxu0  ;;  %2669 = vmatpush3.bf16.msra.mxu0 %v2666_v42  ;;  %v694_v42 = vld [vmem:[#allocation10 + $0x40] sm:$0xff] }
 0x394   :  { %v2670_v9 = vpack.c.bf16 %v2233_v57, %v855_v3  ;;  %v2690_v62 = vpack.c.bf16 %v695_v52, %v694_v42  ;;  %v696_v57 = vld [vmem:[#allocation10 + $0x50] sm:$0xff]  ;;  %v697_v3 = vld [vmem:[#allocation10 + $0x58] sm:$0xff] }
 0x395   :  { %v1195_v42 = vld [vmem:[#allocation13 + $0x18] sm:$0xff] }
 0x396   :  { %2671 = vmatprep.subr.bf16.mxu0 %v2670_v9 }
 0x397   :  { %2673 = vmatpush3.bf16.msra.mxu0 %v2670_v9  ;;  %v2694_v9 = vpack.c.bf16 %v697_v3, %v696_v57  ;;  %v1197_v57 = vld [vmem:[#allocation13 + $0x28] sm:$0xff] }
 0x398   :  { %2675 = vmatprep.subr.bf16.mxu0 %v2674_v8 }
 0x39a   :  { %2267 = vmatmul.mubr.f32.vlgmr.msra.gmra.mrb[32].mxu0 %v3357_v44 }
 0x39b   :  { %2677 = vmatpush3.bf16.msra.mxu0 %v2674_v8  ;;  %2269 = vmatprep.mubr.f32.mxu0 %v3359_v45  ;;  %v698_v8 = vld [vmem:[#allocation10 + $0x60] sm:$0xff] }
 0x39c   :  { %2679 = vmatprep.subr.bf16.mxu0 %v2678_v36  ;;  %v2698_v30 = vpack.c.bf16 %v699_v27, %v698_v8 }
 0x39e   :  { %2270 = vmatmul.mubr.f32.gmra.mrb[34].mxu0 %v3363_v49 }
 0x39f   :  { %2681 = vmatpush3.bf16.msra.mxu0 %v2678_v36  ;;  %2272 = vmatprep.mubr.f32.mxu0 %v3365_v50  ;;  %v700_v36 = vld [vmem:[#allocation10 + $0x70] sm:$0xff] }
 0x3a0   :  { %2683 = vmatprep.subr.bf16.mxu0 %v2682_v17  ;;  %v2702_v33 = vpack.c.bf16 %v701_v39, %v700_v36 }
 0x3a2   :  { %2273 = vmatmul.mubr.f32.gmra.mrb[36].mxu0 %v3369_v54 }
 0x3a3   :  { %2685 = vmatpush3.bf16.msra.mxu0 %v2682_v17  ;;  %2275 = vmatprep.mubr.f32.mxu0 %v3371_v55  ;;  %v1192_v17 = vld [vmem:[#allocation13] sm:$0xff] }
 0x3a4   :  { %2687 = vmatprep.subr.bf16.mxu0 %v2686_v47  ;;  %v3516_v23 = vpack.c.bf16 %v1193_v20, %v1192_v17 }
 0x3a6   :  { %2276 = vmatmul.mubr.f32.gmra.mrb[38].mxu0 %v3375_v59 }
 0x3a7   :  { %2689 = vmatpush3.bf16.msra.mxu0 %v2686_v47  ;;  %2278 = vmatprep.mubr.f32.mxu0 %v3377_v60  ;;  %v1194_v47 = vld [vmem:[#allocation13 + $0x10] sm:$0xff] }
 0x3a8   :  { %2691 = vmatprep.subr.bf16.mxu0 %v2690_v62  ;;  %v3522_v52 = vpack.c.bf16 %v1195_v42, %v1194_v47 }
 0x3aa   :  { %2279 = vmatmul.mubr.f32.gmra.mrb[40].mxu0 %v3381_v0 }
 0x3ab   :  { %2693 = vmatpush3.bf16.msra.mxu0 %v2690_v62  ;;  %2281 = vmatprep.mubr.f32.mxu0 %v3383_v1  ;;  %v1196_v62 = vld [vmem:[#allocation13 + $0x20] sm:$0xff] }
 0x3ac   :  { %2695 = vmatprep.subr.bf16.mxu0 %v2694_v9  ;;  %v3530_v3 = vpack.c.bf16 %v1197_v57, %v1196_v62 }
 0x3ae   :  { %2282 = vmatmul.mubr.f32.gmra.mrb[42].mxu0 %v3387_v5 }
 0x3af   :  { %2697 = vmatpush3.bf16.msra.mxu0 %v2694_v9  ;;  %2284 = vmatprep.mubr.f32.mxu0 %v3389_v6 }
 0x3b0   :  { %2699 = vmatprep.subr.bf16.mxu0 %v2698_v30 }
 0x3b2   :  { %2285 = vmatmul.mubr.f32.gmra.mrb[44].mxu0 %v3393_v11 }
 0x3b3   :  { %2701 = vmatpush3.bf16.msra.mxu0 %v2698_v30  ;;  %2287 = vmatprep.mubr.f32.mxu0 %v3395_v12 }
 0x3b4   :  { %2703 = vmatprep.subr.bf16.mxu0 %v2702_v33 }
 0x3b6   :  { %2288 = vmatmul.mubr.f32.gmra.mrb[46].mxu0 %v3399_v14 }
 0x3b7   :  { %2705 = vmatpush3.bf16.msra.mxu0 %v2702_v33  ;;  %2322 = vmatprep.mubr.f32.mxu0 %v670_v32  ;;  %v1199_v32 = vld [vmem:[#allocation13 + $0x38] sm:$0xff] }
 0x3b8   :  { %2771 = vmatprep.subr.bf16.mxu0 %v3516_v23  ;;  %v3538_v29 = vpack.c.bf16 %v1199_v32, %v1198_v31 }
 0x3ba   :  { %2323 = vmatmul.mubr.f32.vlgmr.msra.gmra.mrb[32].mxu0 %v671_v34  ;;  %v1200_v34 = vld [vmem:[#allocation13 + $0x40] sm:$0xff] }
 0x3bb   :  { %2325 = vmatprep.mubr.f32.mxu0 %v672_v38  ;;  %2773 = vmatpush3.bf16.msra.mxu0 %v3516_v23  ;;  %v3546_v35 = vpack.c.bf16 %v1201_v37, %v1200_v34  ;;  %v1202_v38 = vld [vmem:[#allocation13 + $0x50] sm:$0xff] }
 0x3bc   :  { %2775 = vmatprep.subr.bf16.mxu0 %v3522_v52 }
 0x3be   :  { %2326 = vmatmul.mubr.f32.gmra.mrb[34].mxu0 %v673_v15  ;;  %v1203_v15 = vld [vmem:[#allocation13 + $0x58] sm:$0xff] }
 0x3bf   :  { %2328 = vmatprep.mubr.f32.mxu0 %v674_v19  ;;  %2777 = vmatpush3.bf16.msra.mxu0 %v3522_v52  ;;  %v3554_v16 = vpack.c.bf16 %v1203_v15, %v1202_v38  ;;  %v1205_v19 = vld [vmem:[#allocation13 + $0x68] sm:$0xff] }
 0x3c0   :  { %2779 = vmatprep.subr.bf16.mxu0 %v3530_v3 }
 0x3c2   :  { %2329 = vmatmul.mubr.f32.gmra.mrb[36].mxu0 %v675_v21  ;;  %v3562_v21 = vpack.c.bf16 %v1205_v19, %v1204_v18 }
 0x3c3   :  { %2331 = vmatprep.mubr.f32.mxu0 %v676_v41  ;;  %2781 = vmatpush3.bf16.msra.mxu0 %v3530_v3  ;;  %v1206_v41 = vld [vmem:[#allocation13 + $0x70] sm:$0xff] }
 0x3c4   :  { %2783 = vmatprep.subr.bf16.mxu0 %v3538_v29  ;;  %v3577_v48 = vpack.c.bf16 %v1207_v46, %v1206_v41 }
 0x3c6   :  { %2332 = vmatmul.mubr.f32.gmra.mrb[38].mxu0 %v677_v43  ;;  %v2734_v43 = vpack.c.bf16 %v1223_v24, %v1222_v22 }
 0x3c7   :  { %2334 = vmatprep.mubr.f32.mxu0 %v678_v51  ;;  %2785 = vmatpush3.bf16.msra.mxu0 %v3538_v29  ;;  %v3584_v51 = vld [vmem:[%s3739_s7] ss:$0 sm:$0xff] }
 0x3c8   :  { %2787 = vmatprep.subr.bf16.mxu0 %v3546_v35  ;;  %2735 = vmatprep.subr.bf16.mxu1 %v2734_v43 }
 0x3c9   :  { %2737 = vmatpush3.bf16.msra.mxu1 %v2734_v43 }
 0x3ca   :  { %2335 = vmatmul.mubr.f32.gmra.mrb[40].mxu0 %v679_v53 }
 0x3cb   :  { %2337 = vmatprep.mubr.f32.mxu0 %v680_v61  ;;  %2789 = vmatpush3.bf16.msra.mxu0 %v3546_v35 }
 0x3cc   :  { %2791 = vmatprep.subr.bf16.mxu0 %v3554_v16 }
 0x3ce   :  { %2338 = vmatmul.mubr.f32.gmra.mrb[42].mxu0 %v681_v63 }
 0x3cf   :  { %2340 = vmatprep.mubr.f32.mxu0 %v682_v7  ;;  %2793 = vmatpush3.bf16.msra.mxu0 %v3554_v16 }
 0x3d0   :  { %2795 = vmatprep.subr.bf16.mxu0 %v3562_v21 }
 0x3d2   :  { %2341 = vmatmul.mubr.f32.gmra.mrb[44].mxu0 %v683_v10 }
 0x3d3   :  { %2343 = vmatprep.mubr.f32.mxu0 %v684_v26  ;;  %2797 = vmatpush3.bf16.msra.mxu0 %v3562_v21 }
 0x3d4   :  { %2799 = vmatprep.subr.bf16.mxu0 %v3577_v48 }
 0x3d6   :  { %2344 = vmatmul.mubr.f32.gmra.mrb[46].mxu0 %v685_v28 }
 0x3d7   :  { %2801 = vmatpush3.bf16.msra.mxu0 %v3577_v48 }
 0x48d   :  { %v2324_v53 = vpop.f32.mrb[32].mxu0 }
 0x48e   :  { %v1161_v56 = vadd.f32 %v2324_v53, %v3584_v51  ;;  %v1075_v58 = vpop.f32.mrb[33].mxu0 }
 0x48f   :  { %v1160_v61 = vadd.f32 %v3584_v51, %v1075_v58 }
 0x490   :  { %v1177_v4 = vmax.f32 %v1161_v56, 0.0 }
 0x491   :  { %v1176_v63 = vmax.f32 %v1160_v61, 0.0  ;;  %v2327_v2 = vpop.f32.mrb[34].mxu0 }
 0x492   :  { %v1163_v7 = vadd.f32 %v2327_v2, %v3584_v51  ;;  %v1085_v10 = vpop.f32.mrb[35].mxu0 }
 0x493   :  { %v1162_v13 = vadd.f32 %v3584_v51, %v1085_v10  ;;  %2378 = vmatprep.mubr.f32.mxu1 %v1176_v63  ;;  %2490 = vmatprep.mubr.f32.mxu0 %v1176_v63 }
 0x494   :  { %2379 = vmatmul.mubr.f32.vlgmr.msra.gmra.mrb[16].mxu1 %v1177_v4  ;;  %2491 = vmatmul.mubr.f32.vlgmr.msra.gmra.mrb[48].mxu0 %v1177_v4  ;;  %v1179_v28 = vmax.f32 %v1163_v7, 0.0 }
 0x495   :  { %v1178_v25 = vmax.f32 %v1162_v13, 0.0  ;;  %v2330_v26 = vpop.f32.mrb[36].mxu0 }
 0x496   :  { %v1165_v9 = vadd.f32 %v2330_v26, %v3584_v51  ;;  %v1095_v8 = vpop.f32.mrb[37].mxu0 }
 0x497   :  { %v1164_v27 = vadd.f32 %v3584_v51, %v1095_v8  ;;  %2381 = vmatprep.mubr.f32.mxu1 %v1178_v25  ;;  %2493 = vmatprep.mubr.f32.mxu0 %v1178_v25 }
 0x498   :  { %2382 = vmatmul.mubr.f32.gmra.mrb[18].mxu1 %v1179_v28  ;;  %2494 = vmatmul.mubr.f32.gmra.mrb[50].mxu0 %v1179_v28  ;;  %v1181_v39 = vmax.f32 %v1165_v9, 0.0 }
 0x499   :  { %v1180_v30 = vmax.f32 %v1164_v27, 0.0  ;;  %v2333_v36 = vpop.f32.mrb[38].mxu0 }
 0x49a   :  { %v1167_v33 = vadd.f32 %v2333_v36, %v3584_v51  ;;  %v1105_v17 = vpop.f32.mrb[39].mxu0 }
 0x49b   :  { %v1166_v20 = vadd.f32 %v3584_v51, %v1105_v17  ;;  %2384 = vmatprep.mubr.f32.mxu1 %v1180_v30  ;;  %2496 = vmatprep.mubr.f32.mxu0 %v1180_v30 }
 0x49c   :  { %2385 = vmatmul.mubr.f32.gmra.mrb[20].mxu1 %v1181_v39  ;;  %2497 = vmatmul.mubr.f32.gmra.mrb[52].mxu0 %v1181_v39  ;;  %v1183_v62 = vmax.f32 %v1167_v33, 0.0 }
 0x49d   :  { %v1182_v47 = vmax.f32 %v1166_v20, 0.0  ;;  %v2336_v42 = vpop.f32.mrb[40].mxu0 }
 0x49e   :  { %v3595_v57 = vadd.f32 %v2336_v42, %v3584_v51  ;;  %v1115_v31 = vpop.f32.mrb[41].mxu0 }
 0x49f   :  { %v3598_v32 = vadd.f32 %v3584_v51, %v1115_v31  ;;  %2387 = vmatprep.mubr.f32.mxu1 %v1182_v47  ;;  %2499 = vmatprep.mubr.f32.mxu0 %v1182_v47 }
 0x4a0   :  { %2388 = vmatmul.mubr.f32.gmra.mrb[22].mxu1 %v1183_v62  ;;  %2500 = vmatmul.mubr.f32.gmra.mrb[54].mxu0 %v1183_v62  ;;  %v1185_v38 = vmax.f32 %v3595_v57, 0.0 }
 0x4a1   :  { %v1184_v34 = vmax.f32 %v3598_v32, 0.0  ;;  %v2339_v37 = vpop.f32.mrb[42].mxu0 }
 0x4a2   :  { %v3603_v15 = vadd.f32 %v2339_v37, %v3584_v51  ;;  %v1125_v18 = vpop.f32.mrb[43].mxu0 }
 0x4a3   :  { %v3606_v19 = vadd.f32 %v3584_v51, %v1125_v18  ;;  %2390 = vmatprep.mubr.f32.mxu1 %v1184_v34 }
 0x4a4   :  { %2391 = vmatmul.mubr.f32.gmra.mrb[24].mxu1 %v1185_v38  ;;  %v1187_v41 = vmax.f32 %v3603_v15, 0.0 }
 0x4a5   :  { %v1186_v22 = vmax.f32 %v3606_v19, 0.0  ;;  %v2342_v24 = vpop.f32.mrb[44].mxu0 }
 0x4a6   :  { %v3615_v43 = vadd.f32 %v2342_v24, %v3584_v51  ;;  %v1135_v46 = vpop.f32.mrb[45].mxu0 }
 0x4a7   :  { %v3618_v53 = vadd.f32 %v3584_v51, %v1135_v46  ;;  %2393 = vmatprep.mubr.f32.mxu1 %v1186_v22 }
 0x4a8   :  { %2394 = vmatmul.mubr.f32.gmra.mrb[26].mxu1 %v1187_v41  ;;  %v1189_v61 = vmax.f32 %v3615_v43, 0.0 }
 0x4a9   :  { %v1188_v56 = vmax.f32 %v3618_v53, 0.0  ;;  %v2345_v58 = vpop.f32.mrb[46].mxu0 }
 0x4aa   :  { %v3627_v63 = vadd.f32 %v2345_v58, %v3584_v51  ;;  %v1145_v2 = vpop.f32.mrb[47].mxu0 }
 0x4ab   :  { %v3630_v4 = vadd.f32 %v3584_v51, %v1145_v2  ;;  %2396 = vmatprep.mubr.f32.mxu1 %v1188_v56 }
 0x4ac   :  { %2397 = vmatmul.mubr.f32.gmra.mrb[28].mxu1 %v1189_v61  ;;  %v1191_v10 = vmax.f32 %v3627_v63, 0.0 }
 0x4ad   :  { %v1190_v7 = vmax.f32 %v3630_v4, 0.0 }
 0x4af   :  { %2399 = vmatprep.mubr.f32.mxu1 %v1190_v7 }
 0x4b0   :  { %2400 = vmatmul.mubr.f32.gmra.mrb[30].mxu1 %v1191_v10 }
 0x4b1   :  { %2434 = vmatprep.mubr.f32.mxu1 %v3354_v40 }
 0x567   :  { %v2380_v51 = vpop.f32.mrb[16].mxu1  ;;  %v3643_v13 = vpop.f32.mrb[48].mxu0 }
 0x568   :  { %v1291_v25 = vpop.f32.mrb[17].mxu1  ;;  %v3645_v26 = vpop.f32.mrb[49].mxu0 }
 0x569   :  { %v2738_v28 = vpack.c.bf16 %v2380_v51, %v1291_v25 }
 0x56b   :  { %v2383_v9 = vpop.f32.mrb[18].mxu1  ;;  %2739 = vmatprep.subr.bf16.mxu1 %v2738_v28  ;;  %v3647_v8 = vpop.f32.mrb[50].mxu0 }
 0x56c   :  { %v1301_v27 = vpop.f32.mrb[19].mxu1  ;;  %2741 = vmatpush3.bf16.msra.mxu1 %v2738_v28  ;;  %v3649_v30 = vpop.f32.mrb[51].mxu0 }
 0x56d   :  { %v2742_v36 = vpack.c.bf16 %v2383_v9, %v1301_v27 }
 0x56f   :  { %v2386_v39 = vpop.f32.mrb[20].mxu1  ;;  %2743 = vmatprep.subr.bf16.mxu1 %v2742_v36  ;;  %v3651_v33 = vpop.f32.mrb[52].mxu0 }
 0x570   :  { %v1311_v40 = vpop.f32.mrb[21].mxu1  ;;  %2745 = vmatpush3.bf16.msra.mxu1 %v2742_v36  ;;  %v3653_v17 = vpop.f32.mrb[53].mxu0 }
 0x571   :  { %v2746_v20 = vpack.c.bf16 %v2386_v39, %v1311_v40 }
 0x573   :  { %v2389_v47 = vpop.f32.mrb[22].mxu1  ;;  %2747 = vmatprep.subr.bf16.mxu1 %v2746_v20  ;;  %v3655_v42 = vpop.f32.mrb[54].mxu0 }
 0x574   :  { %v1321_v62 = vpop.f32.mrb[23].mxu1  ;;  %2749 = vmatpush3.bf16.msra.mxu1 %v2746_v20  ;;  %v3657_v31 = vpop.f32.mrb[55].mxu0 }
 0x575   :  { %v2750_v37 = vpack.c.bf16 %v2389_v47, %v1321_v62 }
 0x577   :  { %v2392_v18 = vpop.f32.mrb[24].mxu1  ;;  %2751 = vmatprep.subr.bf16.mxu1 %v2750_v37 }
 0x578   :  { %v1331_v24 = vpop.f32.mrb[25].mxu1  ;;  %2753 = vmatpush3.bf16.msra.mxu1 %v2750_v37 }
 0x579   :  { %v2754_v46 = vpack.c.bf16 %v2392_v18, %v1331_v24 }
 0x57b   :  { %v2395_v58 = vpop.f32.mrb[26].mxu1  ;;  %2755 = vmatprep.subr.bf16.mxu1 %v2754_v46 }
 0x57c   :  { %v1341_v2 = vpop.f32.mrb[27].mxu1  ;;  %2757 = vmatpush3.bf16.msra.mxu1 %v2754_v46 }
 0x57d   :  { %v2758_v51 = vpack.c.bf16 %v2395_v58, %v1341_v2 }
 0x57f   :  { %v2398_v25 = vpop.f32.mrb[28].mxu1  ;;  %2759 = vmatprep.subr.bf16.mxu1 %v2758_v51 }
 0x580   :  { %v1351_v28 = vpop.f32.mrb[29].mxu1  ;;  %2761 = vmatpush3.bf16.msra.mxu1 %v2758_v51 }
 0x581   :  { %v2762_v9 = vpack.c.bf16 %v2398_v25, %v1351_v28 }
 0x583   :  { %v2401_v27 = vpop.f32.mrb[30].mxu1  ;;  %2763 = vmatprep.subr.bf16.mxu1 %v2762_v9 }
 0x584   :  { %v1361_v36 = vpop.f32.mrb[31].mxu1  ;;  %2765 = vmatpush3.bf16.msra.mxu1 %v2762_v9 }
 0x585   :  { %v2766_v39 = vpack.c.bf16 %v2401_v27, %v1361_v36 }
 0x587   :  { %2767 = vmatprep.subr.bf16.mxu1 %v2766_v39 }
 0x588   :  { %2769 = vmatpush3.bf16.msra.mxu1 %v2766_v39 }
 0x589   :  { %2802 = vmatprep.subr.bf16.mxu1 %v3516_v23 }
 0x58b   :  { %2435 = vmatmul.mubr.f32.vlgmr.msra.gmra.mrb[32].mxu1 %v3357_v44  ;;  %v1721_v44 = vld [vmem:[%s3742_s10] ss:$0 sm:$0xff]  ;;  %s3097_s10 = smov [#allocation16]  }
 0x58c   :  { %2810 = vmatpush3.bf16.msra.mxu1 %v3516_v23  ;;  %2437 = vmatprep.mubr.f32.mxu1 %v3359_v45  ;;  %s1703_s3 = sshll.u32 %s3097_s10, 4  ;;  %s1704_s3 = int_to_ptr.vmem [resolvable:$true] %s1703_s3 }
 0x58d   :  { %2803 = vmatprep.subr.bf16.mxu1 %v3522_v52  ;;  %s3053_s20 = scalar_lea.vmem %s1704_s3, 2048  ;;  %p3058_p9 = scmp.lt.s32.totalorder %s1704_s3, %s1704_s3 }
 0x58e   :  { %p3054_p8 = scmp.ne.s32.totalorder %s1704_s3, %s3053_s20  ;;  %p3059_p10 = scmp.lt.s32.totalorder %s3053_s20, %s3053_s20 }
 0x58f   :  { %2438 = vmatmul.mubr.f32.gmra.mrb[34].mxu1 %v3363_v49 }
 0x590   :  { %2811 = vmatpush3.bf16.msra.mxu1 %v3522_v52  ;;  %2440 = vmatprep.mubr.f32.mxu1 %v3365_v50  ;;  %p3060_p11 = por %p3059_p10, %p3058_p9 }
 0x591   :  { %2804 = vmatprep.subr.bf16.mxu1 %v3530_v3 }
 0x592   :  { %p3061_p12 = pnand %p3060_p11, %p3054_p8 }
 0x593   :  { %2441 = vmatmul.mubr.f32.gmra.mrb[36].mxu1 %v3369_v54 }
 0x594   :  { %2812 = vmatpush3.bf16.msra.mxu1 %v3530_v3  ;;  %2443 = vmatprep.mubr.f32.mxu1 %v3371_v55 }
 0x595   :  { %2805 = vmatprep.subr.bf16.mxu1 %v3538_v29 }
 0x597   :  { %2444 = vmatmul.mubr.f32.gmra.mrb[38].mxu1 %v3375_v59 }
 0x598   :  { %2813 = vmatpush3.bf16.msra.mxu1 %v3538_v29  ;;  %2446 = vmatprep.mubr.f32.mxu1 %v3377_v60 }
 0x599   :  { %2806 = vmatprep.subr.bf16.mxu1 %v3546_v35 }
 0x59b   :  { %2447 = vmatmul.mubr.f32.gmra.mrb[40].mxu1 %v3381_v0 }
 0x59c   :  { %2814 = vmatpush3.bf16.msra.mxu1 %v3546_v35  ;;  %2449 = vmatprep.mubr.f32.mxu1 %v3383_v1 }
 0x59d   :  { %2807 = vmatprep.subr.bf16.mxu1 %v3554_v16 }
 0x59f   :  { %2450 = vmatmul.mubr.f32.gmra.mrb[42].mxu1 %v3387_v5 }
 0x5a0   :  { %2815 = vmatpush3.bf16.msra.mxu1 %v3554_v16  ;;  %2452 = vmatprep.mubr.f32.mxu1 %v3389_v6 }
 0x5a1   :  { %2808 = vmatprep.subr.bf16.mxu1 %v3562_v21 }
 0x5a3   :  { %2453 = vmatmul.mubr.f32.gmra.mrb[44].mxu1 %v3393_v11 }
 0x5a4   :  { %2816 = vmatpush3.bf16.msra.mxu1 %v3562_v21  ;;  %2455 = vmatprep.mubr.f32.mxu1 %v3395_v12 }
 0x5a5   :  { %2809 = vmatprep.subr.bf16.mxu1 %v3577_v48 }
 0x5a7   :  { %2456 = vmatmul.mubr.f32.gmra.mrb[46].mxu1 %v3399_v14 }
 0x5a8   :  { %2817 = vmatpush3.bf16.msra.mxu1 %v3577_v48  ;;  %2502 = vmatprep.mubr.f32.mxu1 %v1184_v34 }
 0x5ab   :  { %2503 = vmatmul.mubr.f32.vlgmr.msra.gmra.mrb[40].mxu1 %v1185_v38 }
 0x5ac   :  { %2505 = vmatprep.mubr.f32.mxu1 %v1186_v22 }
 0x5af   :  { %2506 = vmatmul.mubr.f32.gmra.mrb[42].mxu1 %v1187_v41 }
 0x5b0   :  { %2508 = vmatprep.mubr.f32.mxu1 %v1188_v56 }
 0x5b3   :  { %2509 = vmatmul.mubr.f32.gmra.mrb[44].mxu1 %v1189_v61 }
 0x5b4   :  { %2511 = vmatprep.mubr.f32.mxu1 %v1190_v7 }
 0x5b7   :  { %2512 = vmatmul.mubr.f32.gmra.mrb[46].mxu1 %v1191_v10 }
 0x65e   :  { %v2436_v45 = vpop.f32.mrb[32].mxu1 }
 0x65f   :  { %v1587_v49 = vadd.f32 %v3643_v13, %v2436_v45  ;;  %v1436_v50 = vpop.f32.mrb[33].mxu1 }
 0x660   :  { %v1582_v54 = vadd.f32 %v3645_v26, %v1436_v50 }
 0x661   :  { %v1667_v55 = vadd.f32 %v1721_v44, %v1587_v49 }
 0x662   :  { %v1666_v59 = vadd.f32 %v1721_v44, %v1582_v54  ;;  %v2439_v60 = vpop.f32.mrb[34].mxu1 }
 0x663   :  { %1683 = vst [vmem:[#allocation16 + $0x8] sm:$0xff] %v1667_v55  ;;  %v1597_v0 = vadd.f32 %v3647_v8, %v2439_v60  ;;  %v1446_v1 = vpop.f32.mrb[35].mxu1 }
 0x664   :  { %1682 = vst [vmem:[#allocation16] sm:$0xff] %v1666_v59  ;;  %v1592_v5 = vadd.f32 %v3649_v30, %v1446_v1 }
 0x665   :  { %v1669_v6 = vadd.f32 %v1721_v44, %v1597_v0 }
 0x666   :  { %v1668_v11 = vadd.f32 %v1721_v44, %v1592_v5  ;;  %v2442_v12 = vpop.f32.mrb[36].mxu1 }
 0x667   :  { %1685 = vst [vmem:[#allocation16 + $0x18] sm:$0xff] %v1669_v6  ;;  %v1607_v14 = vadd.f32 %v3651_v33, %v2442_v12  ;;  %v1456_v23 = vpop.f32.mrb[37].mxu1 }
 0x668   :  { %1684 = vst [vmem:[#allocation16 + $0x10] sm:$0xff] %v1668_v11  ;;  %v1602_v52 = vadd.f32 %v3653_v17, %v1456_v23 }
 0x669   :  { %v1671_v3 = vadd.f32 %v1721_v44, %v1607_v14 }
 0x66a   :  { %v1670_v29 = vadd.f32 %v1721_v44, %v1602_v52  ;;  %v2445_v35 = vpop.f32.mrb[38].mxu1 }
 0x66b   :  { %1687 = vst [vmem:[#allocation16 + $0x28] sm:$0xff] %v1671_v3  ;;  %v1617_v16 = vadd.f32 %v3655_v42, %v2445_v35  ;;  %v1466_v21 = vpop.f32.mrb[39].mxu1 }
 0x66c   :  { %1686 = vst [vmem:[#allocation16 + $0x20] sm:$0xff] %v1670_v29  ;;  %v1612_v48 = vadd.f32 %v3657_v31, %v1466_v21 }
 0x66d   :  { %v1673_v57 = vadd.f32 %v1721_v44, %v1617_v16 }
 0x66e   :  { %v1672_v32 = vadd.f32 %v1721_v44, %v1612_v48 }
 0x66f   :  { %1689 = vst [vmem:[#allocation16 + $0x38] sm:$0xff] %v1673_v57 }
 0x670   :  { %1688 = vst [vmem:[#allocation16 + $0x30] sm:$0xff] %v1672_v32 }
 0x67e   :  { %v2504_v34 = vpop.f32.mrb[40].mxu1 }
 0x67f   :  { %v1675_v38 = vadd.f32 %v2504_v34, %v1721_v44  ;;  %v1621_v15 = vpop.f32.mrb[41].mxu1 }
 0x680   :  { %v1674_v19 = vadd.f32 %v1721_v44, %v1621_v15 }
 0x681   :  { %1691 = vst [vmem:[#allocation16 + $0x48] sm:$0xff] %v1675_v38 }
 0x682   :  { %1690 = vst [vmem:[#allocation16 + $0x40] sm:$0xff] %v1674_v19  ;;  %v2507_v22 = vpop.f32.mrb[42].mxu1 }
 0x683   :  { %v1677_v41 = vadd.f32 %v2507_v22, %v1721_v44  ;;  %v1631_v43 = vpop.f32.mrb[43].mxu1 }
 0x684   :  { %v1676_v53 = vadd.f32 %v1721_v44, %v1631_v43 }
 0x685   :  { %1693 = vst [vmem:[#allocation16 + $0x58] sm:$0xff] %v1677_v41 }
 0x686   :  { %1692 = vst [vmem:[#allocation16 + $0x50] sm:$0xff] %v1676_v53  ;;  %v2510_v56 = vpop.f32.mrb[44].mxu1 }
 0x687   :  { %v1679_v61 = vadd.f32 %v2510_v56, %v1721_v44  ;;  %v1641_v63 = vpop.f32.mrb[45].mxu1 }
 0x688   :  { %v1678_v4 = vadd.f32 %v1721_v44, %v1641_v63 }
 0x689   :  { %1695 = vst [vmem:[#allocation16 + $0x68] sm:$0xff] %v1679_v61 }
 0x68a   :  { %1694 = vst [vmem:[#allocation16 + $0x60] sm:$0xff] %v1678_v4  ;;  %v2513_v7 = vpop.f32.mrb[46].mxu1 }
 0x68b   :  { %v1681_v10 = vadd.f32 %v2513_v7, %v1721_v44  ;;  %v1651_v13 = vpop.f32.mrb[47].mxu1 }
 0x68c   :  { %v1680_v26 = vadd.f32 %v1721_v44, %v1651_v13 }
 0x68d   :  { %1697 = vst [vmem:[#allocation16 + $0x78] sm:$0xff] %v1681_v10 }
 0x68e   :  { %1696 = vst [vmem:[#allocation16 + $0x70] sm:$0xff] %v1680_v26 }
 0x68f   :  { %3064 = shalt.err (!%p3061_p12)
}
 0x690   :  { %s3065_s22 = scalar_lea.hbm %s3743_s11, 2048 }
 0x691   :  { %p3066_p13 = scmp.ne.s32.totalorder %s3743_s11, %s3065_s22  ;;  %p3069_p0 = scmp.lt.u32.totalorder %s3065_s22, %s3743_s11 }
 0x693   :  { %p3071_p1 = pnand %p3069_p0, %p3066_p13 }
 0x695   :  { %3074 = shalt.err (!%p3071_p1)
}
 0x696   :  { %1709 = dma.vmem_to_hbm [thread:$0]  %s1704_s3, 2048, %s3743_s11, [#allocation4], %s3089_s29, %s3089_s29, %s3090_s30  }
 0x697   :  { %3085 = dma.done.wait [#allocation4], 2048  }
 0x698   :  { %3086 = vsyncadd [#allocation4], 4294965248 }
 0x699   :  { %1713 = vsyncpa [#allocation3], 1 }
 0x69a   :  { %1714 = vsyncpa [#allocation6], 1 }
 0x69b   :  { %1715 = vsyncpa [#allocation9], 1 }
 0x69c   :  { %1716 = vsyncpa [#allocation12], 1 }
 0x69d   :  { %1717 = vsyncpa [#allocation15], 1 }
 0x69e   :  { %1718 = vsyncpa [#allocation4], 1 }

</bundles_post_ra>
